<compile_context>
chip_gen: v7x
topology: tpu7x:2x2x1
jax: 0.10.0
libtpu: 0.0.40
codegen_flags: <defaults>
</compile_context>

<pallas_src>
import math

import jax
import jax.numpy as jnp
from jax.experimental import pallas as pl
from jax.experimental.pallas import tpu as pltpu  # noqa: F401  (TPU backend)


# ----------------------------------------------------------------------------
# Fused whole-model kernel (grid-less: everything VMEM resident)
# ----------------------------------------------------------------------------
def _make_transformer_kernel(n_layers, num_heads, batch, seq, emb_dim,
                             hidden_dim):
    head_dim = emb_dim // num_heads
    n_rows = batch * seq
    qk_scale = 1.0 / math.sqrt(head_dim)     # Python floats only in the closure
    ln_eps = 1e-5

    def mxu(a, b):
        # bf16 MXU operands, f32 accumulation (v6e/v7x native, fine on v5e MXU;
        # all elementwise / LN / softmax math stays f32).
        return jnp.dot(a.astype(jnp.bfloat16), b.astype(jnp.bfloat16),
                       preferred_element_type=jnp.float32)

    def layer_norm(y, g, b):
        mu = jnp.mean(y, axis=-1, keepdims=True)
        d = y - mu
        var = jnp.mean(d * d, axis=-1, keepdims=True)
        return d * jax.lax.rsqrt(var + ln_eps) * g + b

    def kernel(x_ref, qkvw_ref, qkvb_ref, wo_ref, w1_ref, w2_ref, vec_ref,
               decw_ref, decb_ref, fcw_ref, fcb_ref, out_ref):
        # Additive block-diagonal causal mask over all B*S rows, built fully
        # in-kernel (no HBM input, no captured constants, no integer division).
        r = jax.lax.broadcasted_iota(jnp.int32, (n_rows, n_rows), 0)
        c = jax.lax.broadcasted_iota(jnp.int32, (n_rows, n_rows), 1)
        causal = c <= r
        same = None
        for b in range(batch):
            in_b = ((r >= b * seq) & (r < (b + 1) * seq) &
                    (c >= b * seq) & (c < (b + 1) * seq))
            same = in_b if same is None else (same | in_b)
        add_mask = jnp.where(causal & same, 0.0, -1e30)   # f32, -1e30 ~ -inf

        x = x_ref[...]                                    # (B*S, E), f32

        for l in range(n_layers):
            vec = vec_ref[l]                              # (8, PW) packed vectors
            bo    = vec[0:1, :emb_dim]
            b1    = vec[1:2, :hidden_dim]
            b2    = vec[2:3, :emb_dim]
            ln1_g = vec[3:4, :emb_dim]
            ln1_b = vec[4:5, :emb_dim]
            ln2_g = vec[5:6, :emb_dim]
            ln2_b = vec[6:7, :emb_dim]

            # ---- multi-head self attention (block-diagonal over batch) ----
            xb = x.astype(jnp.bfloat16)
            attn = None
            for h in range(num_heads):
                base = (l * 3) * num_heads + h            # per-head Q/K/V slots
                q = mxu(xb, qkvw_ref[base])                 + qkvb_ref[base]
                k = mxu(xb, qkvw_ref[base + num_heads])     + qkvb_ref[base + num_heads]
                v = mxu(xb, qkvw_ref[base + 2 * num_heads]) + qkvb_ref[base + 2 * num_heads]

                scores = jax.lax.dot_general(
                    q.astype(jnp.bfloat16), k.astype(jnp.bfloat16),
                    (((1,), (1,)), ((), ())),
                    preferred_element_type=jnp.float32) * qk_scale
                scores = scores + add_mask                # (N, N) f32
                m = jnp.max(scores, axis=-1, keepdims=True)
                p = jnp.exp(scores - m)
                denom = jnp.sum(p, axis=-1, keepdims=True)
                o = mxu(p, v)                             # un-normalized (N, hd)
                # Deferred normalization on the small (N, hd) tensor.
                # (pl.reciprocal(denom, approx=True) is the HW-optimal form;
                #  plain divide keeps interpret-mode portability.)
                o = o * (1.0 / denom)
                proj = mxu(o, wo_ref[l * num_heads + h])  # fold out-proj per head
                attn = proj if attn is None else attn + proj
            attn = attn + bo

            # residual + post-LayerNorm (PyTorch default norm_first=False)
            x = layer_norm(x + attn, ln1_g, ln1_b)

            # ---- feed-forward (ReLU) ----
            ff = jnp.maximum(mxu(x, w1_ref[l]) + b1, 0.0)
            ff = mxu(ff, w2_ref[l]) + b2
            x = layer_norm(x + ff, ln2_g, ln2_b)

        # ---- decoder projection: (B*S, E) @ (E, V) ----
        dec = mxu(x, decw_ref[...]) + decb_ref[...]       # (B*S, V) f32

        # ---- flatten (B, S*V) + final fc, fused per batch ----
        # out[b] = sum_{s,v} dec[b*S+s, v] * fc_w[s, v] + fc_b
        fcw = fcw_ref[...]                                # (S, V)
        lane = jax.lax.broadcasted_iota(jnp.int32, (1, batch), 1)
        row = lane.astype(jnp.float32) * 0.0              # traced zeros (no consts)
        for b in range(batch):
            blk = dec[b * seq:(b + 1) * seq, :] * fcw     # static sublane slice
            val = jnp.sum(jnp.sum(blk, axis=1, keepdims=True),
                          axis=0, keepdims=True)          # (1, 1)
            row = row + (lane == b).astype(jnp.float32) * val
        out_ref[...] = row + fcb_ref[...]                 # lane-dense (1, B) store

    return kernel


# ----------------------------------------------------------------------------
# Positional encoding (PosEnc buffer)
# ----------------------------------------------------------------------------
def make_positional_encoding(max_len, d_m):
    pos = jnp.arange(max_len, dtype=jnp.float32)[:, None]
    div = jnp.exp(jnp.arange(0, d_m, 2, dtype=jnp.float32) *
                  (-math.log(10000.0) / d_m))
    pe = jnp.zeros((max_len, d_m), jnp.float32)
    pe = pe.at[:, 0::2].set(jnp.sin(pos * div))
    pe = pe.at[:, 1::2].set(jnp.cos(pos * div))
    return pe


# ----------------------------------------------------------------------------
# Parameter init (deterministic, synthetic; weights stored pre-packed:
# per-head (in, out) Q/K/V stacks, stacked FF weights, packed bias/LN vectors)
# ----------------------------------------------------------------------------
def init_params(key, vocab_size, embedding_dim, num_heads, hidden_dim,
                n_layers, max_len):
    E, H = embedding_dim, num_heads
    hd = E // H
    keys = iter(jax.random.split(key, 16))

    def u(shape, scale):
        return jax.random.uniform(next(keys), shape, jnp.float32, -scale, scale)

    s_attn = 1.0 / math.sqrt(E)
    s_ff2 = 1.0 / math.sqrt(hidden_dim)

    # Per-head Q/K/V weights: (L, 3, H, E, hd) flattened to (L*3*H, E, hd)
    qkv_w = u((n_layers, 3, H, E, hd), s_attn).reshape(n_layers * 3 * H, E, hd)
    qkv_b = u((n_layers, 3, H, 1, hd), s_attn).reshape(n_layers * 3 * H, 1, hd)
    wo = u((n_layers, H, hd, E), s_attn).reshape(n_layers * H, hd, E)
    w1 = u((n_layers, E, hidden_dim), s_attn)
    w2 = u((n_layers, hidden_dim, E), s_ff2)

    # Packed per-layer bias / LayerNorm vectors, rows:
    #   0: attn out bias(E) 1: ff b1(hidden) 2: ff b2(E)
    #   3: ln1 gamma 4: ln1 beta 5: ln2 gamma 6: ln2 beta 7: unused
    pw = max(hidden_dim, E)
    vec = jnp.zeros((n_layers, 8, pw), jnp.float32)
    vec = vec.at[:, 0, :E].set(u((n_layers, E), s_attn))
    vec = vec.at[:, 1, :hidden_dim].set(u((n_layers, hidden_dim), s_attn))
    vec = vec.at[:, 2, :E].set(u((n_layers, E), s_ff2))
    vec = vec.at[:, 3, :E].set(1.0)   # ln1 gamma (beta stays 0)
    vec = vec.at[:, 5, :E].set(1.0)   # ln2 gamma

    s_fc = 1.0 / math.sqrt(vocab_size * max_len)
    return {
        "embedding": u((vocab_size, E), 0.12),
        "pos_enc": make_positional_encoding(max_len, E),
        # MXU weight stacks stored bf16 (halves DMA bytes / vreg footprint).
        "qkv_w": qkv_w.astype(jnp.bfloat16),
        "qkv_b": qkv_b,
        "wo": wo.astype(jnp.bfloat16),
        "w1": w1.astype(jnp.bfloat16),
        "w2": w2.astype(jnp.bfloat16),
        "vec": vec,
        "dec_w": u((E, vocab_size), 0.12).astype(jnp.bfloat16),
        "dec_b": jnp.zeros((1, vocab_size), jnp.float32),
        # fc weight stored as (MAX_LEN, vocab) == row-major reshape of the
        # PyTorch (1, MAX_LEN*vocab) weight.
        "fc_w": u((max_len, vocab_size), s_fc),
        "fc_b": u((1, 1), s_fc),
    }


# ----------------------------------------------------------------------------
# Full model forward (mirrors Transformer.forward)
# ----------------------------------------------------------------------------
def transformer_forward(params, tokens, num_heads):
    S, B = tokens.shape
    E = params["embedding"].shape[1]
    n_layers = params["w1"].shape[0]
    hidden_dim = params["w1"].shape[2]

    # glue: embedding gather * sqrt(E) + positional encoding (fuses in XLA)
    # TODO(synk): all nn.Dropout layers treated as identity (eval semantics).
    x = params["embedding"][tokens.T] * math.sqrt(E)          # (B, S, E)
    x = x + params["pos_enc"][:S][None, :, :]
    x2 = x.reshape(B * S, E).astype(jnp.float32)              # batch-major rows

    kernel = _make_transformer_kernel(n_layers, num_heads, B, S, E, hidden_dim)
    out = pl.pallas_call(
        kernel,
        out_shape=jax.ShapeDtypeStruct((1, B), jnp.float32),  # lane-dense row
    )(x2, params["qkv_w"], params["qkv_b"], params["wo"], params["w1"],
      params["w2"], params["vec"], params["dec_w"], params["dec_b"],
      params["fc_w"], params["fc_b"])

    # PyTorch `.squeeze()` on (B, 1) -> (B,) for B > 1.
    # TODO(synk): for B == 1 torch .squeeze() would also drop the batch dim.
    return out[0]


if __name__ == "__main__":
    vocab_size = 50
    embedding_dim = 16
    num_heads = 2
    hidden_dim = 32     # FFN dim of the encoder layer
    n_layers = 2
    MAX_LEN = 8         # sequence length
    batch = 2

    key = jax.random.PRNGKey(0)
    pkey, xkey = jax.random.split(key)
    params = init_params(pkey, vocab_size, embedding_dim, num_heads,
                         hidden_dim, n_layers, MAX_LEN)
    tokens = jax.random.randint(xkey, (MAX_LEN, batch), 0, vocab_size, jnp.int32)

    out = transformer_forward(params, tokens, num_heads)
    jax.block_until_ready(out)
    assert out.shape == (batch,)
    assert bool(jnp.all(jnp.isfinite(out)))
    print("KERNEL_OK")
</pallas_src>

<mosaic_0001>
module attributes {stable_mosaic.version = 11 : i64} {
  func.func @kernel(%arg0: memref<16x16xf32, #tpu.memory_space<vmem>>, %arg1: memref<12x16x8xbf16, #tpu.memory_space<vmem>>, %arg2: memref<12x1x8xf32, #tpu.memory_space<vmem>>, %arg3: memref<4x8x16xbf16, #tpu.memory_space<vmem>>, %arg4: memref<2x16x32xbf16, #tpu.memory_space<vmem>>, %arg5: memref<2x32x16xbf16, #tpu.memory_space<vmem>>, %arg6: memref<2x8x32xf32, #tpu.memory_space<vmem>>, %arg7: memref<16x50xbf16, #tpu.memory_space<vmem>>, %arg8: memref<1x50xf32, #tpu.memory_space<vmem>>, %arg9: memref<8x50xf32, #tpu.memory_space<vmem>>, %arg10: memref<1x1xf32, #tpu.memory_space<vmem>>, %arg11: memref<1x2xf32, #tpu.memory_space<vmem>>) attributes {dimension_semantics = [], scalar_prefetch = 0 : i64, scratch_operands = 0 : i64, tpu.core_type = #tpu.core_type<tc>} {
    %0 = tpu.iota {dimensions = array<i32: 0>} : vector<16x16xi32>
    %1 = tpu.iota {dimensions = array<i32: 1>} : vector<16x16xi32>
    %2 = arith.cmpi sle, %1, %0 : vector<16x16xi32>
    %c0_i32 = arith.constant 0 : i32
    %3 = vector.broadcast %c0_i32 : i32 to vector<16x16xi32>
    %4 = arith.cmpi sge, %0, %3 : vector<16x16xi32>
    %c8_i32 = arith.constant 8 : i32
    %5 = vector.broadcast %c8_i32 : i32 to vector<16x16xi32>
    %6 = arith.cmpi slt, %0, %5 : vector<16x16xi32>
    %7 = arith.andi %4, %6 : vector<16x16xi1>
    %c0_i32_0 = arith.constant 0 : i32
    %8 = vector.broadcast %c0_i32_0 : i32 to vector<16x16xi32>
    %9 = arith.cmpi sge, %1, %8 : vector<16x16xi32>
    %10 = arith.andi %7, %9 : vector<16x16xi1>
    %c8_i32_1 = arith.constant 8 : i32
    %11 = vector.broadcast %c8_i32_1 : i32 to vector<16x16xi32>
    %12 = arith.cmpi slt, %1, %11 : vector<16x16xi32>
    %13 = arith.andi %10, %12 : vector<16x16xi1>
    %c8_i32_2 = arith.constant 8 : i32
    %14 = vector.broadcast %c8_i32_2 : i32 to vector<16x16xi32>
    %15 = arith.cmpi sge, %0, %14 : vector<16x16xi32>
    %c16_i32 = arith.constant 16 : i32
    %16 = vector.broadcast %c16_i32 : i32 to vector<16x16xi32>
    %17 = arith.cmpi slt, %0, %16 : vector<16x16xi32>
    %18 = arith.andi %15, %17 : vector<16x16xi1>
    %c8_i32_3 = arith.constant 8 : i32
    %19 = vector.broadcast %c8_i32_3 : i32 to vector<16x16xi32>
    %20 = arith.cmpi sge, %1, %19 : vector<16x16xi32>
    %21 = arith.andi %18, %20 : vector<16x16xi1>
    %c16_i32_4 = arith.constant 16 : i32
    %22 = vector.broadcast %c16_i32_4 : i32 to vector<16x16xi32>
    %23 = arith.cmpi slt, %1, %22 : vector<16x16xi32>
    %24 = arith.andi %21, %23 : vector<16x16xi1>
    %25 = arith.ori %13, %24 : vector<16x16xi1>
    %26 = arith.andi %2, %25 : vector<16x16xi1>
    %cst = arith.constant 0.000000e+00 : f32
    %cst_5 = arith.constant -1.000000e+30 : f32
    %27 = vector.broadcast %cst : f32 to vector<16x16xf32>
    %28 = vector.broadcast %cst_5 : f32 to vector<16x16xf32>
    %29 = arith.select %26, %27, %28 : vector<16x16xi1>, vector<16x16xf32>
    %c0 = arith.constant 0 : index
    %c0_6 = arith.constant 0 : index
    %30 = vector.load %arg0[%c0, %c0_6] : memref<16x16xf32, #tpu.memory_space<vmem>>, vector<16x16xf32>
    %c0_7 = arith.constant 0 : index
    %c0_8 = arith.constant 0 : index
    %c0_9 = arith.constant 0 : index
    %31 = vector.load %arg6[%c0_7, %c0_8, %c0_9] : memref<2x8x32xf32, #tpu.memory_space<vmem>>, vector<1x8x32xf32>
    %32 = vector.shape_cast %31 : vector<1x8x32xf32> to vector<8x32xf32>
    %33 = vector.extract_strided_slice %32 {offsets = [0, 0], sizes = [1, 16], strides = [1, 1]} : vector<8x32xf32> to vector<1x16xf32>
    %34 = vector.extract_strided_slice %32 {offsets = [1, 0], sizes = [1, 32], strides = [1, 1]} : vector<8x32xf32> to vector<1x32xf32>
    %35 = vector.extract_strided_slice %32 {offsets = [2, 0], sizes = [1, 16], strides = [1, 1]} : vector<8x32xf32> to vector<1x16xf32>
    %36 = vector.extract_strided_slice %32 {offsets = [3, 0], sizes = [1, 16], strides = [1, 1]} : vector<8x32xf32> to vector<1x16xf32>
    %37 = vector.extract_strided_slice %32 {offsets = [4, 0], sizes = [1, 16], strides = [1, 1]} : vector<8x32xf32> to vector<1x16xf32>
    %38 = vector.extract_strided_slice %32 {offsets = [5, 0], sizes = [1, 16], strides = [1, 1]} : vector<8x32xf32> to vector<1x16xf32>
    %39 = vector.extract_strided_slice %32 {offsets = [6, 0], sizes = [1, 16], strides = [1, 1]} : vector<8x32xf32> to vector<1x16xf32>
    %40 = arith.truncf %30 : vector<16x16xf32> to vector<16x16xbf16>
    %c0_10 = arith.constant 0 : index
    %c0_11 = arith.constant 0 : index
    %c0_12 = arith.constant 0 : index
    %41 = vector.load %arg1[%c0_10, %c0_11, %c0_12] : memref<12x16x8xbf16, #tpu.memory_space<vmem>>, vector<1x16x8xbf16>
    %42 = vector.shape_cast %41 : vector<1x16x8xbf16> to vector<16x8xbf16>
    %cst_13 = arith.constant dense<0.000000e+00> : vector<16x8xf32>
    %43 = tpu.matmul %40, %42, %cst_13 {dimension_numbers = #tpu.dot_dimension_numbers<[1], [0], [0], [1], [0, 0, 1, 1], [], []>} : vector<16x16xbf16>, vector<16x8xbf16>, vector<16x8xf32> -> vector<16x8xf32>
    %c0_14 = arith.constant 0 : index
    %c0_15 = arith.constant 0 : index
    %c0_16 = arith.constant 0 : index
    %44 = vector.load %arg2[%c0_14, %c0_15, %c0_16] : memref<12x1x8xf32, #tpu.memory_space<vmem>>, vector<1x1x8xf32>
    %45 = vector.shape_cast %44 : vector<1x1x8xf32> to vector<1x8xf32>
    %46 = vector.broadcast %45 : vector<1x8xf32> to vector<16x8xf32>
    %47 = arith.addf %43, %46 : vector<16x8xf32>
    %c2 = arith.constant 2 : index
    %c0_17 = arith.constant 0 : index
    %c0_18 = arith.constant 0 : index
    %48 = vector.load %arg1[%c2, %c0_17, %c0_18] : memref<12x16x8xbf16, #tpu.memory_space<vmem>>, vector<1x16x8xbf16>
    %49 = vector.shape_cast %48 : vector<1x16x8xbf16> to vector<16x8xbf16>
    %cst_19 = arith.constant dense<0.000000e+00> : vector<16x8xf32>
    %50 = tpu.matmul %40, %49, %cst_19 {dimension_numbers = #tpu.dot_dimension_numbers<[1], [0], [0], [1], [0, 0, 1, 1], [], []>} : vector<16x16xbf16>, vector<16x8xbf16>, vector<16x8xf32> -> vector<16x8xf32>
    %c2_20 = arith.constant 2 : index
    %c0_21 = arith.constant 0 : index
    %c0_22 = arith.constant 0 : index
    %51 = vector.load %arg2[%c2_20, %c0_21, %c0_22] : memref<12x1x8xf32, #tpu.memory_space<vmem>>, vector<1x1x8xf32>
    %52 = vector.shape_cast %51 : vector<1x1x8xf32> to vector<1x8xf32>
    %53 = vector.broadcast %52 : vector<1x8xf32> to vector<16x8xf32>
    %54 = arith.addf %50, %53 : vector<16x8xf32>
    %c4 = arith.constant 4 : index
    %c0_23 = arith.constant 0 : index
    %c0_24 = arith.constant 0 : index
    %55 = vector.load %arg1[%c4, %c0_23, %c0_24] : memref<12x16x8xbf16, #tpu.memory_space<vmem>>, vector<1x16x8xbf16>
    %56 = vector.shape_cast %55 : vector<1x16x8xbf16> to vector<16x8xbf16>
    %cst_25 = arith.constant dense<0.000000e+00> : vector<16x8xf32>
    %57 = tpu.matmul %40, %56, %cst_25 {dimension_numbers = #tpu.dot_dimension_numbers<[1], [0], [0], [1], [0, 0, 1, 1], [], []>} : vector<16x16xbf16>, vector<16x8xbf16>, vector<16x8xf32> -> vector<16x8xf32>
    %c4_26 = arith.constant 4 : index
    %c0_27 = arith.constant 0 : index
    %c0_28 = arith.constant 0 : index
    %58 = vector.load %arg2[%c4_26, %c0_27, %c0_28] : memref<12x1x8xf32, #tpu.memory_space<vmem>>, vector<1x1x8xf32>
    %59 = vector.shape_cast %58 : vector<1x1x8xf32> to vector<1x8xf32>
    %60 = vector.broadcast %59 : vector<1x8xf32> to vector<16x8xf32>
    %61 = arith.addf %57, %60 : vector<16x8xf32>
    %62 = arith.truncf %47 : vector<16x8xf32> to vector<16x8xbf16>
    %63 = arith.truncf %54 : vector<16x8xf32> to vector<16x8xbf16>
    %cst_29 = arith.constant dense<0.000000e+00> : vector<16x16xf32>
    %64 = tpu.matmul %62, %63, %cst_29 {dimension_numbers = #tpu.dot_dimension_numbers<[1], [1], [0], [0], [0, 0, 1, 0], [], []>} : vector<16x8xbf16>, vector<16x8xbf16>, vector<16x16xf32> -> vector<16x16xf32>
    %cst_30 = arith.constant 0.353553385 : f32
    %65 = vector.broadcast %cst_30 : f32 to vector<16x16xf32>
    %66 = arith.mulf %64, %65 : vector<16x16xf32>
    %67 = arith.addf %66, %29 : vector<16x16xf32>
    %cst_31 = arith.constant dense<0xFF800000> : vector<16xf32>
    %68 = vector.multi_reduction <maximumf>, %67, %cst_31 [1] : vector<16x16xf32> to vector<16xf32>
    %69 = vector.shape_cast %68 : vector<16xf32> to vector<16x1xf32>
    %70 = vector.broadcast %69 : vector<16x1xf32> to vector<16x16xf32>
    %71 = arith.subf %67, %70 : vector<16x16xf32>
    %72 = math.exp %71 : vector<16x16xf32>
    %cst_32 = arith.constant dense<0.000000e+00> : vector<16xf32>
    %73 = vector.multi_reduction <add>, %72, %cst_32 [1] : vector<16x16xf32> to vector<16xf32>
    %74 = vector.shape_cast %73 : vector<16xf32> to vector<16x1xf32>
    %75 = arith.truncf %72 : vector<16x16xf32> to vector<16x16xbf16>
    %76 = arith.truncf %61 : vector<16x8xf32> to vector<16x8xbf16>
    %cst_33 = arith.constant dense<0.000000e+00> : vector<16x8xf32>
    %77 = tpu.matmul %75, %76, %cst_33 {dimension_numbers = #tpu.dot_dimension_numbers<[1], [0], [0], [1], [0, 0, 1, 1], [], []>} : vector<16x16xbf16>, vector<16x8xbf16>, vector<16x8xf32> -> vector<16x8xf32>
    %cst_34 = arith.constant 1.000000e+00 : f32
    %78 = vector.broadcast %cst_34 : f32 to vector<16x1xf32>
    %79 = arith.divf %78, %74 : vector<16x1xf32>
    %80 = vector.broadcast %79 : vector<16x1xf32> to vector<16x8xf32>
    %81 = arith.mulf %77, %80 : vector<16x8xf32>
    %c0_35 = arith.constant 0 : index
    %c0_36 = arith.constant 0 : index
    %c0_37 = arith.constant 0 : index
    %82 = vector.load %arg3[%c0_35, %c0_36, %c0_37] : memref<4x8x16xbf16, #tpu.memory_space<vmem>>, vector<1x8x16xbf16>
    %83 = vector.shape_cast %82 : vector<1x8x16xbf16> to vector<8x16xbf16>
    %84 = arith.truncf %81 : vector<16x8xf32> to vector<16x8xbf16>
    %cst_38 = arith.constant dense<0.000000e+00> : vector<16x16xf32>
    %85 = tpu.matmul %84, %83, %cst_38 {dimension_numbers = #tpu.dot_dimension_numbers<[1], [0], [0], [1], [0, 0, 1, 1], [], []>} : vector<16x8xbf16>, vector<8x16xbf16>, vector<16x16xf32> -> vector<16x16xf32>
    %c1 = arith.constant 1 : index
    %c0_39 = arith.constant 0 : index
    %c0_40 = arith.constant 0 : index
    %86 = vector.load %arg1[%c1, %c0_39, %c0_40] : memref<12x16x8xbf16, #tpu.memory_space<vmem>>, vector<1x16x8xbf16>
    %87 = vector.shape_cast %86 : vector<1x16x8xbf16> to vector<16x8xbf16>
    %cst_41 = arith.constant dense<0.000000e+00> : vector<16x8xf32>
    %88 = tpu.matmul %40, %87, %cst_41 {dimension_numbers = #tpu.dot_dimension_numbers<[1], [0], [0], [1], [0, 0, 1, 1], [], []>} : vector<16x16xbf16>, vector<16x8xbf16>, vector<16x8xf32> -> vector<16x8xf32>
    %c1_42 = arith.constant 1 : index
    %c0_43 = arith.constant 0 : index
    %c0_44 = arith.constant 0 : index
    %89 = vector.load %arg2[%c1_42, %c0_43, %c0_44] : memref<12x1x8xf32, #tpu.memory_space<vmem>>, vector<1x1x8xf32>
    %90 = vector.shape_cast %89 : vector<1x1x8xf32> to vector<1x8xf32>
    %91 = vector.broadcast %90 : vector<1x8xf32> to vector<16x8xf32>
    %92 = arith.addf %88, %91 : vector<16x8xf32>
    %c3 = arith.constant 3 : index
    %c0_45 = arith.constant 0 : index
    %c0_46 = arith.constant 0 : index
    %93 = vector.load %arg1[%c3, %c0_45, %c0_46] : memref<12x16x8xbf16, #tpu.memory_space<vmem>>, vector<1x16x8xbf16>
    %94 = vector.shape_cast %93 : vector<1x16x8xbf16> to vector<16x8xbf16>
    %cst_47 = arith.constant dense<0.000000e+00> : vector<16x8xf32>
    %95 = tpu.matmul %40, %94, %cst_47 {dimension_numbers = #tpu.dot_dimension_numbers<[1], [0], [0], [1], [0, 0, 1, 1], [], []>} : vector<16x16xbf16>, vector<16x8xbf16>, vector<16x8xf32> -> vector<16x8xf32>
    %c3_48 = arith.constant 3 : index
    %c0_49 = arith.constant 0 : index
    %c0_50 = arith.constant 0 : index
    %96 = vector.load %arg2[%c3_48, %c0_49, %c0_50] : memref<12x1x8xf32, #tpu.memory_space<vmem>>, vector<1x1x8xf32>
    %97 = vector.shape_cast %96 : vector<1x1x8xf32> to vector<1x8xf32>
    %98 = vector.broadcast %97 : vector<1x8xf32> to vector<16x8xf32>
    %99 = arith.addf %95, %98 : vector<16x8xf32>
    %c5 = arith.constant 5 : index
    %c0_51 = arith.constant 0 : index
    %c0_52 = arith.constant 0 : index
    %100 = vector.load %arg1[%c5, %c0_51, %c0_52] : memref<12x16x8xbf16, #tpu.memory_space<vmem>>, vector<1x16x8xbf16>
    %101 = vector.shape_cast %100 : vector<1x16x8xbf16> to vector<16x8xbf16>
    %cst_53 = arith.constant dense<0.000000e+00> : vector<16x8xf32>
    %102 = tpu.matmul %40, %101, %cst_53 {dimension_numbers = #tpu.dot_dimension_numbers<[1], [0], [0], [1], [0, 0, 1, 1], [], []>} : vector<16x16xbf16>, vector<16x8xbf16>, vector<16x8xf32> -> vector<16x8xf32>
    %c5_54 = arith.constant 5 : index
    %c0_55 = arith.constant 0 : index
    %c0_56 = arith.constant 0 : index
    %103 = vector.load %arg2[%c5_54, %c0_55, %c0_56] : memref<12x1x8xf32, #tpu.memory_space<vmem>>, vector<1x1x8xf32>
    %104 = vector.shape_cast %103 : vector<1x1x8xf32> to vector<1x8xf32>
    %105 = vector.broadcast %104 : vector<1x8xf32> to vector<16x8xf32>
    %106 = arith.addf %102, %105 : vector<16x8xf32>
    %107 = arith.truncf %92 : vector<16x8xf32> to vector<16x8xbf16>
    %108 = arith.truncf %99 : vector<16x8xf32> to vector<16x8xbf16>
    %cst_57 = arith.constant dense<0.000000e+00> : vector<16x16xf32>
    %109 = tpu.matmul %107, %108, %cst_57 {dimension_numbers = #tpu.dot_dimension_numbers<[1], [1], [0], [0], [0, 0, 1, 0], [], []>} : vector<16x8xbf16>, vector<16x8xbf16>, vector<16x16xf32> -> vector<16x16xf32>
    %cst_58 = arith.constant 0.353553385 : f32
    %110 = vector.broadcast %cst_58 : f32 to vector<16x16xf32>
    %111 = arith.mulf %109, %110 : vector<16x16xf32>
    %112 = arith.addf %111, %29 : vector<16x16xf32>
    %cst_59 = arith.constant dense<0xFF800000> : vector<16xf32>
    %113 = vector.multi_reduction <maximumf>, %112, %cst_59 [1] : vector<16x16xf32> to vector<16xf32>
    %114 = vector.shape_cast %113 : vector<16xf32> to vector<16x1xf32>
    %115 = vector.broadcast %114 : vector<16x1xf32> to vector<16x16xf32>
    %116 = arith.subf %112, %115 : vector<16x16xf32>
    %117 = math.exp %116 : vector<16x16xf32>
    %cst_60 = arith.constant dense<0.000000e+00> : vector<16xf32>
    %118 = vector.multi_reduction <add>, %117, %cst_60 [1] : vector<16x16xf32> to vector<16xf32>
    %119 = vector.shape_cast %118 : vector<16xf32> to vector<16x1xf32>
    %120 = arith.truncf %117 : vector<16x16xf32> to vector<16x16xbf16>
    %121 = arith.truncf %106 : vector<16x8xf32> to vector<16x8xbf16>
    %cst_61 = arith.constant dense<0.000000e+00> : vector<16x8xf32>
    %122 = tpu.matmul %120, %121, %cst_61 {dimension_numbers = #tpu.dot_dimension_numbers<[1], [0], [0], [1], [0, 0, 1, 1], [], []>} : vector<16x16xbf16>, vector<16x8xbf16>, vector<16x8xf32> -> vector<16x8xf32>
    %cst_62 = arith.constant 1.000000e+00 : f32
    %123 = vector.broadcast %cst_62 : f32 to vector<16x1xf32>
    %124 = arith.divf %123, %119 : vector<16x1xf32>
    %125 = vector.broadcast %124 : vector<16x1xf32> to vector<16x8xf32>
    %126 = arith.mulf %122, %125 : vector<16x8xf32>
    %c1_63 = arith.constant 1 : index
    %c0_64 = arith.constant 0 : index
    %c0_65 = arith.constant 0 : index
    %127 = vector.load %arg3[%c1_63, %c0_64, %c0_65] : memref<4x8x16xbf16, #tpu.memory_space<vmem>>, vector<1x8x16xbf16>
    %128 = vector.shape_cast %127 : vector<1x8x16xbf16> to vector<8x16xbf16>
    %129 = arith.truncf %126 : vector<16x8xf32> to vector<16x8xbf16>
    %cst_66 = arith.constant dense<0.000000e+00> : vector<16x16xf32>
    %130 = tpu.matmul %129, %128, %cst_66 {dimension_numbers = #tpu.dot_dimension_numbers<[1], [0], [0], [1], [0, 0, 1, 1], [], []>} : vector<16x8xbf16>, vector<8x16xbf16>, vector<16x16xf32> -> vector<16x16xf32>
    %131 = arith.addf %85, %130 : vector<16x16xf32>
    %132 = vector.broadcast %33 : vector<1x16xf32> to vector<16x16xf32>
    %133 = arith.addf %131, %132 : vector<16x16xf32>
    %134 = arith.addf %30, %133 : vector<16x16xf32>
    %cst_67 = arith.constant dense<0.000000e+00> : vector<16xf32>
    %135 = vector.multi_reduction <add>, %134, %cst_67 [1] : vector<16x16xf32> to vector<16xf32>
    %136 = vector.shape_cast %135 : vector<16xf32> to vector<16x1xf32>
    %cst_68 = arith.constant 1.600000e+01 : f32
    %137 = vector.broadcast %cst_68 : f32 to vector<16x1xf32>
    %138 = arith.divf %136, %137 : vector<16x1xf32>
    %139 = vector.broadcast %138 : vector<16x1xf32> to vector<16x16xf32>
    %140 = arith.subf %134, %139 : vector<16x16xf32>
    %141 = arith.mulf %140, %140 : vector<16x16xf32>
    %cst_69 = arith.constant dense<0.000000e+00> : vector<16xf32>
    %142 = vector.multi_reduction <add>, %141, %cst_69 [1] : vector<16x16xf32> to vector<16xf32>
    %143 = vector.shape_cast %142 : vector<16xf32> to vector<16x1xf32>
    %cst_70 = arith.constant 1.600000e+01 : f32
    %144 = vector.broadcast %cst_70 : f32 to vector<16x1xf32>
    %145 = arith.divf %143, %144 : vector<16x1xf32>
    %cst_71 = arith.constant 9.99999974E-6 : f32
    %146 = vector.broadcast %cst_71 : f32 to vector<16x1xf32>
    %147 = arith.addf %145, %146 : vector<16x1xf32>
    %148 = math.rsqrt %147 : vector<16x1xf32>
    %149 = vector.broadcast %148 : vector<16x1xf32> to vector<16x16xf32>
    %150 = arith.mulf %140, %149 : vector<16x16xf32>
    %151 = vector.broadcast %36 : vector<1x16xf32> to vector<16x16xf32>
    %152 = arith.mulf %150, %151 : vector<16x16xf32>
    %153 = vector.broadcast %37 : vector<1x16xf32> to vector<16x16xf32>
    %154 = arith.addf %152, %153 : vector<16x16xf32>
    %c0_72 = arith.constant 0 : index
    %c0_73 = arith.constant 0 : index
    %c0_74 = arith.constant 0 : index
    %155 = vector.load %arg4[%c0_72, %c0_73, %c0_74] : memref<2x16x32xbf16, #tpu.memory_space<vmem>>, vector<1x16x32xbf16>
    %156 = vector.shape_cast %155 : vector<1x16x32xbf16> to vector<16x32xbf16>
    %157 = arith.truncf %154 : vector<16x16xf32> to vector<16x16xbf16>
    %cst_75 = arith.constant dense<0.000000e+00> : vector<16x32xf32>
    %158 = tpu.matmul %157, %156, %cst_75 {dimension_numbers = #tpu.dot_dimension_numbers<[1], [0], [0], [1], [0, 0, 1, 1], [], []>} : vector<16x16xbf16>, vector<16x32xbf16>, vector<16x32xf32> -> vector<16x32xf32>
    %159 = vector.broadcast %34 : vector<1x32xf32> to vector<16x32xf32>
    %160 = arith.addf %158, %159 : vector<16x32xf32>
    %cst_76 = arith.constant 0.000000e+00 : f32
    %161 = vector.broadcast %cst_76 : f32 to vector<16x32xf32>
    %162 = arith.maximumf %160, %161 : vector<16x32xf32>
    %c0_77 = arith.constant 0 : index
    %c0_78 = arith.constant 0 : index
    %c0_79 = arith.constant 0 : index
    %163 = vector.load %arg5[%c0_77, %c0_78, %c0_79] : memref<2x32x16xbf16, #tpu.memory_space<vmem>>, vector<1x32x16xbf16>
    %164 = vector.shape_cast %163 : vector<1x32x16xbf16> to vector<32x16xbf16>
    %165 = arith.truncf %162 : vector<16x32xf32> to vector<16x32xbf16>
    %cst_80 = arith.constant dense<0.000000e+00> : vector<16x16xf32>
    %166 = tpu.matmul %165, %164, %cst_80 {dimension_numbers = #tpu.dot_dimension_numbers<[1], [0], [0], [1], [0, 0, 1, 1], [], []>} : vector<16x32xbf16>, vector<32x16xbf16>, vector<16x16xf32> -> vector<16x16xf32>
    %167 = vector.broadcast %35 : vector<1x16xf32> to vector<16x16xf32>
    %168 = arith.addf %166, %167 : vector<16x16xf32>
    %169 = arith.addf %154, %168 : vector<16x16xf32>
    %cst_81 = arith.constant dense<0.000000e+00> : vector<16xf32>
    %170 = vector.multi_reduction <add>, %169, %cst_81 [1] : vector<16x16xf32> to vector<16xf32>
    %171 = vector.shape_cast %170 : vector<16xf32> to vector<16x1xf32>
    %cst_82 = arith.constant 1.600000e+01 : f32
    %172 = vector.broadcast %cst_82 : f32 to vector<16x1xf32>
    %173 = arith.divf %171, %172 : vector<16x1xf32>
    %174 = vector.broadcast %173 : vector<16x1xf32> to vector<16x16xf32>
    %175 = arith.subf %169, %174 : vector<16x16xf32>
    %176 = arith.mulf %175, %175 : vector<16x16xf32>
    %cst_83 = arith.constant dense<0.000000e+00> : vector<16xf32>
    %177 = vector.multi_reduction <add>, %176, %cst_83 [1] : vector<16x16xf32> to vector<16xf32>
    %178 = vector.shape_cast %177 : vector<16xf32> to vector<16x1xf32>
    %cst_84 = arith.constant 1.600000e+01 : f32
    %179 = vector.broadcast %cst_84 : f32 to vector<16x1xf32>
    %180 = arith.divf %178, %179 : vector<16x1xf32>
    %cst_85 = arith.constant 9.99999974E-6 : f32
    %181 = vector.broadcast %cst_85 : f32 to vector<16x1xf32>
    %182 = arith.addf %180, %181 : vector<16x1xf32>
    %183 = math.rsqrt %182 : vector<16x1xf32>
    %184 = vector.broadcast %183 : vector<16x1xf32> to vector<16x16xf32>
    %185 = arith.mulf %175, %184 : vector<16x16xf32>
    %186 = vector.broadcast %38 : vector<1x16xf32> to vector<16x16xf32>
    %187 = arith.mulf %185, %186 : vector<16x16xf32>
    %188 = vector.broadcast %39 : vector<1x16xf32> to vector<16x16xf32>
    %189 = arith.addf %187, %188 : vector<16x16xf32>
    %c1_86 = arith.constant 1 : index
    %c0_87 = arith.constant 0 : index
    %c0_88 = arith.constant 0 : index
    %190 = vector.load %arg6[%c1_86, %c0_87, %c0_88] : memref<2x8x32xf32, #tpu.memory_space<vmem>>, vector<1x8x32xf32>
    %191 = vector.shape_cast %190 : vector<1x8x32xf32> to vector<8x32xf32>
    %192 = vector.extract_strided_slice %191 {offsets = [0, 0], sizes = [1, 16], strides = [1, 1]} : vector<8x32xf32> to vector<1x16xf32>
    %193 = vector.extract_strided_slice %191 {offsets = [1, 0], sizes = [1, 32], strides = [1, 1]} : vector<8x32xf32> to vector<1x32xf32>
    %194 = vector.extract_strided_slice %191 {offsets = [2, 0], sizes = [1, 16], strides = [1, 1]} : vector<8x32xf32> to vector<1x16xf32>
    %195 = vector.extract_strided_slice %191 {offsets = [3, 0], sizes = [1, 16], strides = [1, 1]} : vector<8x32xf32> to vector<1x16xf32>
    %196 = vector.extract_strided_slice %191 {offsets = [4, 0], sizes = [1, 16], strides = [1, 1]} : vector<8x32xf32> to vector<1x16xf32>
    %197 = vector.extract_strided_slice %191 {offsets = [5, 0], sizes = [1, 16], strides = [1, 1]} : vector<8x32xf32> to vector<1x16xf32>
    %198 = vector.extract_strided_slice %191 {offsets = [6, 0], sizes = [1, 16], strides = [1, 1]} : vector<8x32xf32> to vector<1x16xf32>
    %199 = arith.truncf %189 : vector<16x16xf32> to vector<16x16xbf16>
    %c6 = arith.constant 6 : index
    %c0_89 = arith.constant 0 : index
    %c0_90 = arith.constant 0 : index
    %200 = vector.load %arg1[%c6, %c0_89, %c0_90] : memref<12x16x8xbf16, #tpu.memory_space<vmem>>, vector<1x16x8xbf16>
    %201 = vector.shape_cast %200 : vector<1x16x8xbf16> to vector<16x8xbf16>
    %cst_91 = arith.constant dense<0.000000e+00> : vector<16x8xf32>
    %202 = tpu.matmul %199, %201, %cst_91 {dimension_numbers = #tpu.dot_dimension_numbers<[1], [0], [0], [1], [0, 0, 1, 1], [], []>} : vector<16x16xbf16>, vector<16x8xbf16>, vector<16x8xf32> -> vector<16x8xf32>
    %c6_92 = arith.constant 6 : index
    %c0_93 = arith.constant 0 : index
    %c0_94 = arith.constant 0 : index
    %203 = vector.load %arg2[%c6_92, %c0_93, %c0_94] : memref<12x1x8xf32, #tpu.memory_space<vmem>>, vector<1x1x8xf32>
    %204 = vector.shape_cast %203 : vector<1x1x8xf32> to vector<1x8xf32>
    %205 = vector.broadcast %204 : vector<1x8xf32> to vector<16x8xf32>
    %206 = arith.addf %202, %205 : vector<16x8xf32>
    %c8 = arith.constant 8 : index
    %c0_95 = arith.constant 0 : index
    %c0_96 = arith.constant 0 : index
    %207 = vector.load %arg1[%c8, %c0_95, %c0_96] : memref<12x16x8xbf16, #tpu.memory_space<vmem>>, vector<1x16x8xbf16>
    %208 = vector.shape_cast %207 : vector<1x16x8xbf16> to vector<16x8xbf16>
    %cst_97 = arith.constant dense<0.000000e+00> : vector<16x8xf32>
    %209 = tpu.matmul %199, %208, %cst_97 {dimension_numbers = #tpu.dot_dimension_numbers<[1], [0], [0], [1], [0, 0, 1, 1], [], []>} : vector<16x16xbf16>, vector<16x8xbf16>, vector<16x8xf32> -> vector<16x8xf32>
    %c8_98 = arith.constant 8 : index
    %c0_99 = arith.constant 0 : index
    %c0_100 = arith.constant 0 : index
    %210 = vector.load %arg2[%c8_98, %c0_99, %c0_100] : memref<12x1x8xf32, #tpu.memory_space<vmem>>, vector<1x1x8xf32>
    %211 = vector.shape_cast %210 : vector<1x1x8xf32> to vector<1x8xf32>
    %212 = vector.broadcast %211 : vector<1x8xf32> to vector<16x8xf32>
    %213 = arith.addf %209, %212 : vector<16x8xf32>
    %c10 = arith.constant 10 : index
    %c0_101 = arith.constant 0 : index
    %c0_102 = arith.constant 0 : index
    %214 = vector.load %arg1[%c10, %c0_101, %c0_102] : memref<12x16x8xbf16, #tpu.memory_space<vmem>>, vector<1x16x8xbf16>
    %215 = vector.shape_cast %214 : vector<1x16x8xbf16> to vector<16x8xbf16>
    %cst_103 = arith.constant dense<0.000000e+00> : vector<16x8xf32>
    %216 = tpu.matmul %199, %215, %cst_103 {dimension_numbers = #tpu.dot_dimension_numbers<[1], [0], [0], [1], [0, 0, 1, 1], [], []>} : vector<16x16xbf16>, vector<16x8xbf16>, vector<16x8xf32> -> vector<16x8xf32>
    %c10_104 = arith.constant 10 : index
    %c0_105 = arith.constant 0 : index
    %c0_106 = arith.constant 0 : index
    %217 = vector.load %arg2[%c10_104, %c0_105, %c0_106] : memref<12x1x8xf32, #tpu.memory_space<vmem>>, vector<1x1x8xf32>
    %218 = vector.shape_cast %217 : vector<1x1x8xf32> to vector<1x8xf32>
    %219 = vector.broadcast %218 : vector<1x8xf32> to vector<16x8xf32>
    %220 = arith.addf %216, %219 : vector<16x8xf32>
    %221 = arith.truncf %206 : vector<16x8xf32> to vector<16x8xbf16>
    %222 = arith.truncf %213 : vector<16x8xf32> to vector<16x8xbf16>
    %cst_107 = arith.constant dense<0.000000e+00> : vector<16x16xf32>
    %223 = tpu.matmul %221, %222, %cst_107 {dimension_numbers = #tpu.dot_dimension_numbers<[1], [1], [0], [0], [0, 0, 1, 0], [], []>} : vector<16x8xbf16>, vector<16x8xbf16>, vector<16x16xf32> -> vector<16x16xf32>
    %cst_108 = arith.constant 0.353553385 : f32
    %224 = vector.broadcast %cst_108 : f32 to vector<16x16xf32>
    %225 = arith.mulf %223, %224 : vector<16x16xf32>
    %226 = arith.addf %225, %29 : vector<16x16xf32>
    %cst_109 = arith.constant dense<0xFF800000> : vector<16xf32>
    %227 = vector.multi_reduction <maximumf>, %226, %cst_109 [1] : vector<16x16xf32> to vector<16xf32>
    %228 = vector.shape_cast %227 : vector<16xf32> to vector<16x1xf32>
    %229 = vector.broadcast %228 : vector<16x1xf32> to vector<16x16xf32>
    %230 = arith.subf %226, %229 : vector<16x16xf32>
    %231 = math.exp %230 : vector<16x16xf32>
    %cst_110 = arith.constant dense<0.000000e+00> : vector<16xf32>
    %232 = vector.multi_reduction <add>, %231, %cst_110 [1] : vector<16x16xf32> to vector<16xf32>
    %233 = vector.shape_cast %232 : vector<16xf32> to vector<16x1xf32>
    %234 = arith.truncf %231 : vector<16x16xf32> to vector<16x16xbf16>
    %235 = arith.truncf %220 : vector<16x8xf32> to vector<16x8xbf16>
    %cst_111 = arith.constant dense<0.000000e+00> : vector<16x8xf32>
    %236 = tpu.matmul %234, %235, %cst_111 {dimension_numbers = #tpu.dot_dimension_numbers<[1], [0], [0], [1], [0, 0, 1, 1], [], []>} : vector<16x16xbf16>, vector<16x8xbf16>, vector<16x8xf32> -> vector<16x8xf32>
    %cst_112 = arith.constant 1.000000e+00 : f32
    %237 = vector.broadcast %cst_112 : f32 to vector<16x1xf32>
    %238 = arith.divf %237, %233 : vector<16x1xf32>
    %239 = vector.broadcast %238 : vector<16x1xf32> to vector<16x8xf32>
    %240 = arith.mulf %236, %239 : vector<16x8xf32>
    %c2_113 = arith.constant 2 : index
    %c0_114 = arith.constant 0 : index
    %c0_115 = arith.constant 0 : index
    %241 = vector.load %arg3[%c2_113, %c0_114, %c0_115] : memref<4x8x16xbf16, #tpu.memory_space<vmem>>, vector<1x8x16xbf16>
    %242 = vector.shape_cast %241 : vector<1x8x16xbf16> to vector<8x16xbf16>
    %243 = arith.truncf %240 : vector<16x8xf32> to vector<16x8xbf16>
    %cst_116 = arith.constant dense<0.000000e+00> : vector<16x16xf32>
    %244 = tpu.matmul %243, %242, %cst_116 {dimension_numbers = #tpu.dot_dimension_numbers<[1], [0], [0], [1], [0, 0, 1, 1], [], []>} : vector<16x8xbf16>, vector<8x16xbf16>, vector<16x16xf32> -> vector<16x16xf32>
    %c7 = arith.constant 7 : index
    %c0_117 = arith.constant 0 : index
    %c0_118 = arith.constant 0 : index
    %245 = vector.load %arg1[%c7, %c0_117, %c0_118] : memref<12x16x8xbf16, #tpu.memory_space<vmem>>, vector<1x16x8xbf16>
    %246 = vector.shape_cast %245 : vector<1x16x8xbf16> to vector<16x8xbf16>
    %cst_119 = arith.constant dense<0.000000e+00> : vector<16x8xf32>
    %247 = tpu.matmul %199, %246, %cst_119 {dimension_numbers = #tpu.dot_dimension_numbers<[1], [0], [0], [1], [0, 0, 1, 1], [], []>} : vector<16x16xbf16>, vector<16x8xbf16>, vector<16x8xf32> -> vector<16x8xf32>
    %c7_120 = arith.constant 7 : index
    %c0_121 = arith.constant 0 : index
    %c0_122 = arith.constant 0 : index
    %248 = vector.load %arg2[%c7_120, %c0_121, %c0_122] : memref<12x1x8xf32, #tpu.memory_space<vmem>>, vector<1x1x8xf32>
    %249 = vector.shape_cast %248 : vector<1x1x8xf32> to vector<1x8xf32>
    %250 = vector.broadcast %249 : vector<1x8xf32> to vector<16x8xf32>
    %251 = arith.addf %247, %250 : vector<16x8xf32>
    %c9 = arith.constant 9 : index
    %c0_123 = arith.constant 0 : index
    %c0_124 = arith.constant 0 : index
    %252 = vector.load %arg1[%c9, %c0_123, %c0_124] : memref<12x16x8xbf16, #tpu.memory_space<vmem>>, vector<1x16x8xbf16>
    %253 = vector.shape_cast %252 : vector<1x16x8xbf16> to vector<16x8xbf16>
    %cst_125 = arith.constant dense<0.000000e+00> : vector<16x8xf32>
    %254 = tpu.matmul %199, %253, %cst_125 {dimension_numbers = #tpu.dot_dimension_numbers<[1], [0], [0], [1], [0, 0, 1, 1], [], []>} : vector<16x16xbf16>, vector<16x8xbf16>, vector<16x8xf32> -> vector<16x8xf32>
    %c9_126 = arith.constant 9 : index
    %c0_127 = arith.constant 0 : index
    %c0_128 = arith.constant 0 : index
    %255 = vector.load %arg2[%c9_126, %c0_127, %c0_128] : memref<12x1x8xf32, #tpu.memory_space<vmem>>, vector<1x1x8xf32>
    %256 = vector.shape_cast %255 : vector<1x1x8xf32> to vector<1x8xf32>
    %257 = vector.broadcast %256 : vector<1x8xf32> to vector<16x8xf32>
    %258 = arith.addf %254, %257 : vector<16x8xf32>
    %c11 = arith.constant 11 : index
    %c0_129 = arith.constant 0 : index
    %c0_130 = arith.constant 0 : index
    %259 = vector.load %arg1[%c11, %c0_129, %c0_130] : memref<12x16x8xbf16, #tpu.memory_space<vmem>>, vector<1x16x8xbf16>
    %260 = vector.shape_cast %259 : vector<1x16x8xbf16> to vector<16x8xbf16>
    %cst_131 = arith.constant dense<0.000000e+00> : vector<16x8xf32>
    %261 = tpu.matmul %199, %260, %cst_131 {dimension_numbers = #tpu.dot_dimension_numbers<[1], [0], [0], [1], [0, 0, 1, 1], [], []>} : vector<16x16xbf16>, vector<16x8xbf16>, vector<16x8xf32> -> vector<16x8xf32>
    %c11_132 = arith.constant 11 : index
    %c0_133 = arith.constant 0 : index
    %c0_134 = arith.constant 0 : index
    %262 = vector.load %arg2[%c11_132, %c0_133, %c0_134] : memref<12x1x8xf32, #tpu.memory_space<vmem>>, vector<1x1x8xf32>
    %263 = vector.shape_cast %262 : vector<1x1x8xf32> to vector<1x8xf32>
    %264 = vector.broadcast %263 : vector<1x8xf32> to vector<16x8xf32>
    %265 = arith.addf %261, %264 : vector<16x8xf32>
    %266 = arith.truncf %251 : vector<16x8xf32> to vector<16x8xbf16>
    %267 = arith.truncf %258 : vector<16x8xf32> to vector<16x8xbf16>
    %cst_135 = arith.constant dense<0.000000e+00> : vector<16x16xf32>
    %268 = tpu.matmul %266, %267, %cst_135 {dimension_numbers = #tpu.dot_dimension_numbers<[1], [1], [0], [0], [0, 0, 1, 0], [], []>} : vector<16x8xbf16>, vector<16x8xbf16>, vector<16x16xf32> -> vector<16x16xf32>
    %cst_136 = arith.constant 0.353553385 : f32
    %269 = vector.broadcast %cst_136 : f32 to vector<16x16xf32>
    %270 = arith.mulf %268, %269 : vector<16x16xf32>
    %271 = arith.addf %270, %29 : vector<16x16xf32>
    %cst_137 = arith.constant dense<0xFF800000> : vector<16xf32>
    %272 = vector.multi_reduction <maximumf>, %271, %cst_137 [1] : vector<16x16xf32> to vector<16xf32>
    %273 = vector.shape_cast %272 : vector<16xf32> to vector<16x1xf32>
    %274 = vector.broadcast %273 : vector<16x1xf32> to vector<16x16xf32>
    %275 = arith.subf %271, %274 : vector<16x16xf32>
    %276 = math.exp %275 : vector<16x16xf32>
    %cst_138 = arith.constant dense<0.000000e+00> : vector<16xf32>
    %277 = vector.multi_reduction <add>, %276, %cst_138 [1] : vector<16x16xf32> to vector<16xf32>
    %278 = vector.shape_cast %277 : vector<16xf32> to vector<16x1xf32>
    %279 = arith.truncf %276 : vector<16x16xf32> to vector<16x16xbf16>
    %280 = arith.truncf %265 : vector<16x8xf32> to vector<16x8xbf16>
    %cst_139 = arith.constant dense<0.000000e+00> : vector<16x8xf32>
    %281 = tpu.matmul %279, %280, %cst_139 {dimension_numbers = #tpu.dot_dimension_numbers<[1], [0], [0], [1], [0, 0, 1, 1], [], []>} : vector<16x16xbf16>, vector<16x8xbf16>, vector<16x8xf32> -> vector<16x8xf32>
    %cst_140 = arith.constant 1.000000e+00 : f32
    %282 = vector.broadcast %cst_140 : f32 to vector<16x1xf32>
    %283 = arith.divf %282, %278 : vector<16x1xf32>
    %284 = vector.broadcast %283 : vector<16x1xf32> to vector<16x8xf32>
    %285 = arith.mulf %281, %284 : vector<16x8xf32>
    %c3_141 = arith.constant 3 : index
    %c0_142 = arith.constant 0 : index
    %c0_143 = arith.constant 0 : index
    %286 = vector.load %arg3[%c3_141, %c0_142, %c0_143] : memref<4x8x16xbf16, #tpu.memory_space<vmem>>, vector<1x8x16xbf16>
    %287 = vector.shape_cast %286 : vector<1x8x16xbf16> to vector<8x16xbf16>
    %288 = arith.truncf %285 : vector<16x8xf32> to vector<16x8xbf16>
    %cst_144 = arith.constant dense<0.000000e+00> : vector<16x16xf32>
    %289 = tpu.matmul %288, %287, %cst_144 {dimension_numbers = #tpu.dot_dimension_numbers<[1], [0], [0], [1], [0, 0, 1, 1], [], []>} : vector<16x8xbf16>, vector<8x16xbf16>, vector<16x16xf32> -> vector<16x16xf32>
    %290 = arith.addf %244, %289 : vector<16x16xf32>
    %291 = vector.broadcast %192 : vector<1x16xf32> to vector<16x16xf32>
    %292 = arith.addf %290, %291 : vector<16x16xf32>
    %293 = arith.addf %189, %292 : vector<16x16xf32>
    %cst_145 = arith.constant dense<0.000000e+00> : vector<16xf32>
    %294 = vector.multi_reduction <add>, %293, %cst_145 [1] : vector<16x16xf32> to vector<16xf32>
    %295 = vector.shape_cast %294 : vector<16xf32> to vector<16x1xf32>
    %cst_146 = arith.constant 1.600000e+01 : f32
    %296 = vector.broadcast %cst_146 : f32 to vector<16x1xf32>
    %297 = arith.divf %295, %296 : vector<16x1xf32>
    %298 = vector.broadcast %297 : vector<16x1xf32> to vector<16x16xf32>
    %299 = arith.subf %293, %298 : vector<16x16xf32>
    %300 = arith.mulf %299, %299 : vector<16x16xf32>
    %cst_147 = arith.constant dense<0.000000e+00> : vector<16xf32>
    %301 = vector.multi_reduction <add>, %300, %cst_147 [1] : vector<16x16xf32> to vector<16xf32>
    %302 = vector.shape_cast %301 : vector<16xf32> to vector<16x1xf32>
    %cst_148 = arith.constant 1.600000e+01 : f32
    %303 = vector.broadcast %cst_148 : f32 to vector<16x1xf32>
    %304 = arith.divf %302, %303 : vector<16x1xf32>
    %cst_149 = arith.constant 9.99999974E-6 : f32
    %305 = vector.broadcast %cst_149 : f32 to vector<16x1xf32>
    %306 = arith.addf %304, %305 : vector<16x1xf32>
    %307 = math.rsqrt %306 : vector<16x1xf32>
    %308 = vector.broadcast %307 : vector<16x1xf32> to vector<16x16xf32>
    %309 = arith.mulf %299, %308 : vector<16x16xf32>
    %310 = vector.broadcast %195 : vector<1x16xf32> to vector<16x16xf32>
    %311 = arith.mulf %309, %310 : vector<16x16xf32>
    %312 = vector.broadcast %196 : vector<1x16xf32> to vector<16x16xf32>
    %313 = arith.addf %311, %312 : vector<16x16xf32>
    %c1_150 = arith.constant 1 : index
    %c0_151 = arith.constant 0 : index
    %c0_152 = arith.constant 0 : index
    %314 = vector.load %arg4[%c1_150, %c0_151, %c0_152] : memref<2x16x32xbf16, #tpu.memory_space<vmem>>, vector<1x16x32xbf16>
    %315 = vector.shape_cast %314 : vector<1x16x32xbf16> to vector<16x32xbf16>
    %316 = arith.truncf %313 : vector<16x16xf32> to vector<16x16xbf16>
    %cst_153 = arith.constant dense<0.000000e+00> : vector<16x32xf32>
    %317 = tpu.matmul %316, %315, %cst_153 {dimension_numbers = #tpu.dot_dimension_numbers<[1], [0], [0], [1], [0, 0, 1, 1], [], []>} : vector<16x16xbf16>, vector<16x32xbf16>, vector<16x32xf32> -> vector<16x32xf32>
    %318 = vector.broadcast %193 : vector<1x32xf32> to vector<16x32xf32>
    %319 = arith.addf %317, %318 : vector<16x32xf32>
    %cst_154 = arith.constant 0.000000e+00 : f32
    %320 = vector.broadcast %cst_154 : f32 to vector<16x32xf32>
    %321 = arith.maximumf %319, %320 : vector<16x32xf32>
    %c1_155 = arith.constant 1 : index
    %c0_156 = arith.constant 0 : index
    %c0_157 = arith.constant 0 : index
    %322 = vector.load %arg5[%c1_155, %c0_156, %c0_157] : memref<2x32x16xbf16, #tpu.memory_space<vmem>>, vector<1x32x16xbf16>
    %323 = vector.shape_cast %322 : vector<1x32x16xbf16> to vector<32x16xbf16>
    %324 = arith.truncf %321 : vector<16x32xf32> to vector<16x32xbf16>
    %cst_158 = arith.constant dense<0.000000e+00> : vector<16x16xf32>
    %325 = tpu.matmul %324, %323, %cst_158 {dimension_numbers = #tpu.dot_dimension_numbers<[1], [0], [0], [1], [0, 0, 1, 1], [], []>} : vector<16x32xbf16>, vector<32x16xbf16>, vector<16x16xf32> -> vector<16x16xf32>
    %326 = vector.broadcast %194 : vector<1x16xf32> to vector<16x16xf32>
    %327 = arith.addf %325, %326 : vector<16x16xf32>
    %328 = arith.addf %313, %327 : vector<16x16xf32>
    %cst_159 = arith.constant dense<0.000000e+00> : vector<16xf32>
    %329 = vector.multi_reduction <add>, %328, %cst_159 [1] : vector<16x16xf32> to vector<16xf32>
    %330 = vector.shape_cast %329 : vector<16xf32> to vector<16x1xf32>
    %cst_160 = arith.constant 1.600000e+01 : f32
    %331 = vector.broadcast %cst_160 : f32 to vector<16x1xf32>
    %332 = arith.divf %330, %331 : vector<16x1xf32>
    %333 = vector.broadcast %332 : vector<16x1xf32> to vector<16x16xf32>
    %334 = arith.subf %328, %333 : vector<16x16xf32>
    %335 = arith.mulf %334, %334 : vector<16x16xf32>
    %cst_161 = arith.constant dense<0.000000e+00> : vector<16xf32>
    %336 = vector.multi_reduction <add>, %335, %cst_161 [1] : vector<16x16xf32> to vector<16xf32>
    %337 = vector.shape_cast %336 : vector<16xf32> to vector<16x1xf32>
    %cst_162 = arith.constant 1.600000e+01 : f32
    %338 = vector.broadcast %cst_162 : f32 to vector<16x1xf32>
    %339 = arith.divf %337, %338 : vector<16x1xf32>
    %cst_163 = arith.constant 9.99999974E-6 : f32
    %340 = vector.broadcast %cst_163 : f32 to vector<16x1xf32>
    %341 = arith.addf %339, %340 : vector<16x1xf32>
    %342 = math.rsqrt %341 : vector<16x1xf32>
    %343 = vector.broadcast %342 : vector<16x1xf32> to vector<16x16xf32>
    %344 = arith.mulf %334, %343 : vector<16x16xf32>
    %345 = vector.broadcast %197 : vector<1x16xf32> to vector<16x16xf32>
    %346 = arith.mulf %344, %345 : vector<16x16xf32>
    %347 = vector.broadcast %198 : vector<1x16xf32> to vector<16x16xf32>
    %348 = arith.addf %346, %347 : vector<16x16xf32>
    %c0_164 = arith.constant 0 : index
    %c0_165 = arith.constant 0 : index
    %349 = vector.load %arg7[%c0_164, %c0_165] : memref<16x50xbf16, #tpu.memory_space<vmem>>, vector<16x50xbf16>
    %350 = arith.truncf %348 : vector<16x16xf32> to vector<16x16xbf16>
    %cst_166 = arith.constant dense<0.000000e+00> : vector<16x50xf32>
    %351 = tpu.matmul %350, %349, %cst_166 {dimension_numbers = #tpu.dot_dimension_numbers<[1], [0], [0], [1], [0, 0, 1, 1], [], []>} : vector<16x16xbf16>, vector<16x50xbf16>, vector<16x50xf32> -> vector<16x50xf32>
    %c0_167 = arith.constant 0 : index
    %c0_168 = arith.constant 0 : index
    %352 = vector.load %arg8[%c0_167, %c0_168] : memref<1x50xf32, #tpu.memory_space<vmem>>, vector<1x50xf32>
    %353 = vector.broadcast %352 : vector<1x50xf32> to vector<16x50xf32>
    %354 = arith.addf %351, %353 : vector<16x50xf32>
    %c0_169 = arith.constant 0 : index
    %c0_170 = arith.constant 0 : index
    %355 = vector.load %arg9[%c0_169, %c0_170] : memref<8x50xf32, #tpu.memory_space<vmem>>, vector<8x50xf32>
    %356 = tpu.iota {dimensions = array<i32: 1>} : vector<1x2xi32>
    %357 = arith.sitofp %356 : vector<1x2xi32> to vector<1x2xf32>
    %cst_171 = arith.constant 0.000000e+00 : f32
    %358 = vector.broadcast %cst_171 : f32 to vector<1x2xf32>
    %359 = arith.mulf %357, %358 : vector<1x2xf32>
    %360 = vector.extract_strided_slice %354 {offsets = [0, 0], sizes = [8, 50], strides = [1, 1]} : vector<16x50xf32> to vector<8x50xf32>
    %361 = arith.mulf %360, %355 : vector<8x50xf32>
    %cst_172 = arith.constant dense<0.000000e+00> : vector<8xf32>
    %362 = vector.multi_reduction <add>, %361, %cst_172 [1] : vector<8x50xf32> to vector<8xf32>
    %363 = vector.shape_cast %362 : vector<8xf32> to vector<8x1xf32>
    %cst_173 = arith.constant dense<0.000000e+00> : vector<1xf32>
    %364 = vector.multi_reduction <add>, %363, %cst_173 [0] : vector<8x1xf32> to vector<1xf32>
    %365 = vector.shape_cast %364 : vector<1xf32> to vector<1x1xf32>
    %c0_i32_174 = arith.constant 0 : i32
    %366 = vector.broadcast %c0_i32_174 : i32 to vector<1x2xi32>
    %367 = arith.cmpi eq, %356, %366 : vector<1x2xi32>
    %368 = arith.extui %367 : vector<1x2xi1> to vector<1x2xi32>
    %369 = arith.sitofp %368 : vector<1x2xi32> to vector<1x2xf32>
    %370 = vector.broadcast %365 : vector<1x1xf32> to vector<1x2xf32>
    %371 = arith.mulf %369, %370 : vector<1x2xf32>
    %372 = arith.addf %359, %371 : vector<1x2xf32>
    %373 = vector.extract_strided_slice %354 {offsets = [8, 0], sizes = [8, 50], strides = [1, 1]} : vector<16x50xf32> to vector<8x50xf32>
    %374 = arith.mulf %373, %355 : vector<8x50xf32>
    %cst_175 = arith.constant dense<0.000000e+00> : vector<8xf32>
    %375 = vector.multi_reduction <add>, %374, %cst_175 [1] : vector<8x50xf32> to vector<8xf32>
    %376 = vector.shape_cast %375 : vector<8xf32> to vector<8x1xf32>
    %cst_176 = arith.constant dense<0.000000e+00> : vector<1xf32>
    %377 = vector.multi_reduction <add>, %376, %cst_176 [0] : vector<8x1xf32> to vector<1xf32>
    %378 = vector.shape_cast %377 : vector<1xf32> to vector<1x1xf32>
    %c1_i32 = arith.constant 1 : i32
    %379 = vector.broadcast %c1_i32 : i32 to vector<1x2xi32>
    %380 = arith.cmpi eq, %356, %379 : vector<1x2xi32>
    %381 = arith.extui %380 : vector<1x2xi1> to vector<1x2xi32>
    %382 = arith.sitofp %381 : vector<1x2xi32> to vector<1x2xf32>
    %383 = vector.broadcast %378 : vector<1x1xf32> to vector<1x2xf32>
    %384 = arith.mulf %382, %383 : vector<1x2xf32>
    %385 = arith.addf %372, %384 : vector<1x2xf32>
    %c0_177 = arith.constant 0 : index
    %c0_178 = arith.constant 0 : index
    %386 = vector.load %arg10[%c0_177, %c0_178] : memref<1x1xf32, #tpu.memory_space<vmem>>, vector<1x1xf32>
    %387 = vector.broadcast %386 : vector<1x1xf32> to vector<1x2xf32>
    %388 = arith.addf %385, %387 : vector<1x2xf32>
    %c0_179 = arith.constant 0 : index
    %c0_180 = arith.constant 0 : index
    %389 = vector.load %arg11[%c0_179, %c0_180] : memref<1x2xf32, #tpu.memory_space<vmem>>, vector<1x2xf32>
    tpu.vector_store %arg11[%c0_179, %c0_180], %388 {strides = array<i32>} : memref<1x2xf32, #tpu.memory_space<vmem>>, vector<1x2xf32>,
    return
  }
}

</mosaic_0001>

<bundles_post_ra>
// kernel: tpu_custom_call.1
= control target key start
LH: loop header
LB: loop body
LE: loop exit
PB: predicated region body
PF: predicated region fallthrough
CT: control target
= control target key end

     0   :  { %s2947_s0 = inlined_call_operand.vmem [shape: f32[16,16], index: 0, kind: input, shape index: {}]   ;;  %s2948_s1 = inlined_call_operand.vmem [shape: bf16[12,16,8], index: 1, kind: input, shape index: {}]   ;;  %s2949_s2 = inlined_call_operand.vmem [shape: f32[12,1,8], index: 2, kind: input, shape index: {}]   ;;  %s2950_s3 = inlined_call_operand.vmem [shape: bf16[4,8,16], index: 3, kind: input, shape index: {}]   ;;  %s2951_s4 = inlined_call_operand.vmem [shape: bf16[2,16,32], index: 4, kind: input, shape index: {}]   ;;  %s2952_s5 = inlined_call_operand.vmem [shape: bf16[2,32,16], index: 5, kind: input, shape index: {}]   ;;  %s2953_s6 = inlined_call_operand.vmem [shape: f32[2,8,32], index: 6, kind: input, shape index: {}]   ;;  %s2954_s7 = inlined_call_operand.vmem [shape: bf16[16,50], index: 7, kind: input, shape index: {}]   ;;  %s2955_s8 = inlined_call_operand.vmem [shape: f32[1,50], index: 8, kind: input, shape index: {}]   ;;  %s2956_s9 = inlined_call_operand.vmem [shape: f32[8,50], index: 9, kind: input, shape index: {}]   ;;  %s2957_s10 = inlined_call_operand.<no memory space> [shape: f32[1,1], index: 10, kind: input, shape index: {}]   ;;  %s2958_s11 = inlined_call_operand.hbm [shape: f32[1,2], index: 11, kind: output, shape index: {}]  }
   0x1   :  { %v16_v0 = vstv %s2957_s10 }
   0x2   :  { %17 = vst [vmem:[#allocation2] sm:$0x1] %v16_v0 }
   0x3   :  { %v2375_v1 = vld [vmem:[%s2948_s1 + $0x10] sm:$0xff]   ;;  %v2466_v2 = vmov 0.0   ;;  %v2541_v3 = vld [vmem:[%s2947_s0] sm:$0xff]  ;;  %v2546_v4 = vld [vmem:[%s2947_s0 + $0x8] sm:$0xff]  ;;  %vm2467_vm0 = vmmov 0   ;;  %vm98_vm1 = vcmask 130048  }
   0x4   :  { %2197 = vmatprep.subr.bf16.mxu1 %v2466_v2  ;;  %2191 = vmatprep.subr.bf16.mxu0 %v2466_v2  ;;  %v2553_v5 = vpack.c.bf16 %v2546_v4, %v2541_v3  ;;  %v2376_v6 = vld [vmem:[%s2948_s1] sm:$0xff]  }
   0x5   :  { %2198 = vmatpush3.bf16.msra.mxu1 %v2375_v1  ;;  %2199 = vmatprep.mubr.msk.bf16.mxu1 %vm2467_vm0, %v2466_v2 }
   0x6   :  { %2193 = vmatprep.mubr.msk.bf16.mxu0 %vm2467_vm0, %v2466_v2  ;;  %2209 = vmatprep.subr.bf16.mxu1 %v2466_v2 }
   0x7   :  { %2192 = vmatpush3.bf16.msra.mxu0 %v2376_v6 }
   0x8   :  { %2200 = vmatmul.mubr.msk.bf16.vlgmr.msra.gmra.mrb[0].mxu1 %vm98_vm1, %v2553_v5  ;;  %2203 = vmatprep.subr.bf16.mxu0 %v2466_v2 }
   0x9   :  { %2211 = vmatprep.mubr.msk.bf16.mxu1 %vm2467_vm0, %v2466_v2 }
   0xa   :  { %2194 = vmatmul.mubr.msk.bf16.vlgmr.msra.gmra.mrb[0].mxu0 %vm98_vm1, %v2553_v5 }
   0xb   :  { %2205 = vmatprep.mubr.msk.bf16.mxu0 %vm2467_vm0, %v2466_v2 }
   0xc   :  { %18 = vsyncpa [#allocation4], 0  ;;  %v2377_v7 = vld [vmem:[%s2948_s1 + $0x20] sm:$0xff]   ;;  %vm261_vm2 = vcmask 64512   ;;  %v42_v25 = vlaneseq  ;;  %v2468_v30 = vmov -1e+30  }
   0xd   :  { %2204 = vmatpush3.bf16.msra.mxu0 %v2377_v7  ;;  %v2031_v8 = vld [vmem:[%s2949_s2 + $0x2] ss:$0 sm:$0xff]  ;;  %v2025_v10 = vld [vmem:[%s2949_s2] ss:$0 sm:$0xff]  ;;  %v2037_v42 = vld [vmem:[%s2949_s2 + $0x4] ss:$0 sm:$0xff] }
   0xe   :  { %2215 = vmatprep.subr.bf16.mxu0 %v2466_v2  ;;  %v2589_v26 = vshrl.u32 %v42_v25, 7  ;;  %v2591_v27 = vand.u32 127, %v42_v25  ;;  %v2379_v50 = vld [vmem:[%s2948_s1 + $0x8] sm:$0xff]   ;;  %v2378_v60 = vld [vmem:[%s2948_s1 + $0x18] sm:$0xff]   ;;  %v2045_v62 = vld [vmem:[%s2949_s2 + $0x1] ss:$0 sm:$0xff] }
   0xf   :  { %vm688_vm11 = vcmask 1043456   ;;  %vm907_vm12 = vcmask 261120   ;;  %vm1968_vm13 = vcmask 408576  }
  0x10   :  { %v44_v28 = vadd.s32 8, %v2589_v26  ;;  %vm67_vm3 = vcmp.ge.s32.totalorder %v2591_v27, 8  ;;  %vm70_vm4 = vcmp.lt.s32.totalorder %v2591_v27, 16  ;;  %vm47_vm5 = vcmp.le.s32.totalorder %v2591_v27, %v2589_v26 }
  0x11   :  { %vm58_vm6 = vcmp.lt.s32.totalorder %v2591_v27, 8  ;;  %vm72_vm8 = vmand %vm67_vm3, %vm70_vm4  ;;  %vm1978_vm14 = vcmp.eq.s32.totalorder %v2591_v27, 0  ;;  %vm1993_vm15 = vcmp.eq.s32.totalorder %v2591_v27, 1 }
  0x12   :  { %2206 = vmatmul.mubr.msk.bf16.vlgmr.msra.gmra.mrb[4].mxu0 %vm98_vm1, %v2553_v5  ;;  %vm48_vm7 = vcmp.le.s32.totalorder %v2591_v27, %v44_v28  ;;  %vm75_vm9 = vmand %vm47_vm5, %vm58_vm6 }
  0x13   :  { %2217 = vmatprep.mubr.msk.bf16.mxu0 %vm2467_vm0, %v2466_v2  ;;  %vm76_vm10 = vmand %vm48_vm7, %vm72_vm8  ;;  %v2600_v31 = vsel %vm75_vm9, 0.0, %v2468_v30 }
  0x14   :  { %v2602_v35 = vsel %vm76_vm10, 0.0, %v2468_v30 }
  0xdb   :  { %v194_v9 = vpop.f32.mrb[0].mxu1 }
  0xdc   :  { %v2201_v11 = vpop.f32.mrb[1].mxu1  ;;  %v195_v14 = vadd.f32 %v2031_v8, %v194_v9 }
  0xdd   :  { %v197_v12 = vpop.f32.mrb[2].mxu1  ;;  %v136_v13 = vpop.f32.mrb[0].mxu0 }
  0xde   :  { %v198_v15 = vadd.f32 %v2031_v8, %v197_v12  ;;  %v2202_v16 = vpop.f32.mrb[3].mxu1  ;;  %v137_v17 = vadd.f32 %v2025_v10, %v136_v13  ;;  %v2195_v18 = vpop.f32.mrb[1].mxu0 }
  0xdf   :  { %v139_v19 = vpop.f32.mrb[2].mxu0 }
  0xe0   :  { %v260_v20 = vpack.c.bf16 %v198_v15, %v195_v14  ;;  %v140_v21 = vadd.f32 %v2025_v10, %v139_v19  ;;  %v2196_v22 = vpop.f32.mrb[3].mxu0  ;;  %v2380_v10 = vld [vmem:[%s2948_s1 + $0x28] sm:$0xff]   ;;  %v2051_v15 = vld [vmem:[%s2949_s2 + $0x3] ss:$0 sm:$0xff] }
  0xe2   :  { %v259_v23 = vpack.c.bf16 %v140_v21, %v137_v17  ;;  %v266_v24 = vsel %vm261_vm2, %v260_v20, 0 }
  0xe3   :  { %2210 = vmatpush3.bf16.xpose.msra.mxu1 %v266_v24 }
  0xe4   :  { %2221 = vmatprep.subr.bf16.mxu1 %v2466_v2 }
  0xe5   :  { %v252_v43 = vpop.f32.mrb[4].mxu0 }
  0xe6   :  { %v253_v44 = vadd.f32 %v2037_v42, %v252_v43  ;;  %v2207_v45 = vpop.f32.mrb[5].mxu0 }
  0xe7   :  { %v255_v46 = vpop.f32.mrb[6].mxu0 }
  0xe8   :  { %v256_v47 = vadd.f32 %v2037_v42, %v255_v46  ;;  %v2208_v48 = vpop.f32.mrb[7].mxu0 }
  0xea   :  { %2212 = vmatmul.mubr.msk.bf16.vlgmr.msra.gmra.mrb[4].mxu1 %vm261_vm2, %v259_v23  ;;  %v332_v49 = vpack.c.bf16 %v256_v47, %v253_v44 }
  0xeb   :  { %2223 = vmatprep.mubr.msk.bf16.mxu1 %vm2467_vm0, %v2466_v2  ;;  %2222 = vmatpush3.bf16.msra.mxu1 %v2379_v50 }
  0xec   :  { %2216 = vmatpush3.bf16.msra.mxu0 %v332_v49  ;;  %2233 = vmatprep.subr.bf16.mxu1 %v2466_v2 }
  0xed   :  { %2227 = vmatprep.subr.bf16.mxu0 %v2466_v2 }
  0xf2   :  { %2224 = vmatmul.mubr.msk.bf16.vlgmr.msra.gmra.mrb[8].mxu1 %vm98_vm1, %v2553_v5 }
  0xf3   :  { %2235 = vmatprep.mubr.msk.bf16.mxu1 %vm2467_vm0, %v2466_v2  ;;  %2234 = vmatpush3.bf16.msra.mxu1 %v2380_v10 }
  0xf4   :  { %2245 = vmatprep.subr.bf16.mxu1 %v2466_v2 }
  0xfa   :  { %2236 = vmatmul.mubr.msk.bf16.vlgmr.msra.gmra.mrb[12].mxu1 %vm98_vm1, %v2553_v5 }
  0xfb   :  { %2247 = vmatprep.mubr.msk.bf16.mxu1 %vm2467_vm0, %v2466_v2 }
 0x1bd   :  { %v302_v29 = vpop.f32.mrb[4].mxu1 }
 0x1be   :  { %v309_v32 = vmul.f32 0.35355338, %v302_v29  ;;  %v2213_v33 = vpop.f32.mrb[5].mxu1 }
 0x1bf   :  { %v305_v34 = vpop.f32.mrb[6].mxu1 }
 0x1c0   :  { %v310_v36 = vmul.f32 0.35355338, %v305_v34  ;;  %v2214_v37 = vpop.f32.mrb[7].mxu1  ;;  %v311_v38 = vadd.f32 %v309_v32, %v2600_v31 }
 0x1c2   :  { %v313_v39 = vsel %vm98_vm1, %v311_v38, -inf  ;;  %v312_v40 = vadd.f32 %v310_v36, %v2602_v35 }
 0x1c3   :  { %314 = vmax.xlane.f32.xlu0 %v313_v39 }
 0x1c4   :  { %v316_v41 = vsel %vm98_vm1, %v312_v40, -inf }
 0x1c5   :  { %v436_v63 = vpop.f32.mrb[8].mxu1 }
 0x1c6   :  { %v437_v0 = vadd.f32 %v2045_v62, %v436_v63  ;;  %v2225_v1 = vpop.f32.mrb[9].mxu1 }
 0x1c7   :  { %317 = vmax.xlane.f32.xlu0 %v316_v41  ;;  %v439_v6 = vpop.f32.mrb[10].mxu1 }
 0x1c8   :  { %v440_v7 = vadd.f32 %v2045_v62, %v439_v6  ;;  %v2226_v8 = vpop.f32.mrb[11].mxu1  ;;  %v2062_v6 = vld [vmem:[%s2950_s3 + $0x4] sm:$0xf] }
 0x1ca   :  { %v559_v9 = vpack.c.bf16 %v440_v7, %v437_v0  ;;  %v690_v7 = vsel %vm688_vm11, %v2062_v6, 0 }
 0x1cd   :  { %v552_v39 = vpop.f32.mrb[12].mxu1 }
 0x1ce   :  { %v2237_v41 = vpop.f32.mrb[13].mxu1 }
 0x1cf   :  { %v555_v42 = vpop.f32.mrb[14].mxu1 }
 0x1d0   :  { %v2238_v44 = vpop.f32.mrb[15].mxu1 }
 0x250   :  { %v315_v51 = vpop.xlane.xlu0 %314 }
 0x251   :  { %v319_v52 = vsub.f32 %v311_v38, %v315_v51  ;;  %v2057_v38 = vld [vmem:[%s2949_s2 + $0x5] ss:$0 sm:$0xff] }
 0x252   :  { %v556_v43 = vadd.f32 %v2057_v38, %v555_v42 }
 0x253   :  { %v321_v53 = vmul.f32 1.442695, %v319_v52 }
 0x254   :  { %v318_v54 = vpop.xlane.xlu0 %317 }
 0x255   :  { %2394 = vpow2.f32 %v321_v53  ;;  %v320_v55 = vsub.f32 %v312_v40, %v318_v54  ;;  %v553_v40 = vadd.f32 %v2057_v38, %v552_v39 }
 0x257   :  { %v323_v56 = vmul.f32 1.442695, %v320_v55  ;;  %v631_v45 = vpack.c.bf16 %v556_v43, %v553_v40 }
 0x259   :  { %2396 = vpow2.f32 %v323_v56  ;;  %2246 = vmatpush3.bf16.msra.mxu1 %v631_v45  ;;  %v383_v56 = vld [vmem:[%s2950_s3] sm:$0xf] }
 0x25a   :  { %2257 = vmatprep.subr.bf16.mxu1 %v2466_v2  ;;  %v737_v62 = vsel %vm688_vm11, %v383_v56, 0  ;;  %v817_v56 = vsub.s32 3, %v2589_v26 }
 0x25f   :  { %v2395_v57 = vpop.eup %2394 }
 0x260   :  { %v325_v58 = vsel %vm98_vm1, %v2395_v57, 0.0 }
 0x261   :  { %326 = vadd.xlane.f32.xlu0 %v325_v58 }
 0x263   :  { %v2397_v59 = vpop.eup %2396 }
 0x264   :  { %v331_v61 = vpack.c.bf16 %v2397_v59, %v2395_v57  ;;  %v328_v37 = vsel %vm98_vm1, %v2397_v59, 0.0 }
 0x266   :  { %2218 = vmatmul.mubr.msk.bf16.vlgmr.msra.gmra.mrb[8].mxu0 %vm98_vm1, %v331_v61 }
 0x267   :  { %2228 = vmatpush3.bf16.msra.mxu0 %v2378_v60  ;;  %2229 = vmatprep.mubr.msk.bf16.mxu0 %vm2467_vm0, %v2466_v2 }
 0x268   :  { %2239 = vmatprep.subr.bf16.mxu0 %v2466_v2 }
 0x26e   :  { %2230 = vmatmul.mubr.msk.bf16.vlgmr.msra.gmra.mrb[12].mxu0 %vm98_vm1, %v2553_v5 }
 0x26f   :  { %2241 = vmatprep.mubr.msk.bf16.mxu0 %vm2467_vm0, %v2466_v2 }
 0x2ee   :  { %v327_v50 = vpop.xlane.xlu0 %326 }
 0x339   :  { %v2643_v11 = vpop.f32.mrb[8].mxu0 }
 0x33a   :  { %v2219_v12 = vpop.f32.mrb[9].mxu0 }
 0x33b   :  { %v2645_v13 = vpop.f32.mrb[10].mxu0 }
 0x33c   :  { %v2220_v14 = vpop.f32.mrb[11].mxu0 }
 0x341   :  { %v494_v16 = vpop.f32.mrb[12].mxu0 }
 0x342   :  { %v2231_v17 = vpop.f32.mrb[13].mxu0  ;;  %v495_v19 = vadd.f32 %v2051_v15, %v494_v16 }
 0x343   :  { %v497_v18 = vpop.f32.mrb[14].mxu0 }
 0x344   :  { %v498_v20 = vadd.f32 %v2051_v15, %v497_v18  ;;  %v2232_v21 = vpop.f32.mrb[15].mxu0 }
 0x346   :  { %v560_v5 = vpack.c.bf16 %v498_v20, %v495_v19 }
 0x348   :  { %v565_v22 = vsel %vm261_vm2, %v560_v5, 0 }
 0x349   :  { %2240 = vmatpush3.bf16.xpose.msra.mxu0 %v565_v22  ;;  %v2688_v22 = vsub.s32 0, %v2589_v26 }
 0x34a   :  { %2251 = vmatprep.subr.bf16.mxu0 %v2466_v2 }
 0x350   :  { %2242 = vmatmul.mubr.msk.bf16.vlgmr.msra.gmra.mrb[16].mxu0 %vm261_vm2, %v559_v9 }
 0x351   :  { %2253 = vmatprep.mubr.msk.bf16.mxu0 %vm2467_vm0, %v2466_v2  ;;  %2252 = vmatpush3.bf16.msra.mxu0 %v690_v7 }
 0x352   :  { %2263 = vmatprep.subr.bf16.mxu0 %v2466_v2 }
 0x423   :  { %v601_v23 = vpop.f32.mrb[16].mxu0 }
 0x424   :  { %v608_v24 = vmul.f32 0.35355338, %v601_v23  ;;  %v2243_v25 = vpop.f32.mrb[17].mxu0  ;;  %v2693_v23 = vld [vmem:[%s2953_s6] sm:$0xff] }
 0x425   :  { %v604_v28 = vpop.f32.mrb[18].mxu0 }
 0x426   :  { %v609_v29 = vmul.f32 0.35355338, %v604_v28  ;;  %v2244_v30 = vpop.f32.mrb[19].mxu0  ;;  %v610_v32 = vadd.f32 %v608_v24, %v2600_v31  ;;  %v783_v24 = vrot.slane %v2693_v23, %v2688_v22 }
 0x428   :  { %v612_v33 = vsel %vm98_vm1, %v610_v32, -inf  ;;  %v611_v34 = vadd.f32 %v609_v29, %v2602_v35 }
 0x429   :  { %613 = vmax.xlane.f32.xlu1 %v612_v33 }
 0x42a   :  { %v615_v36 = vsel %vm98_vm1, %v611_v34, -inf }
 0x42d   :  { %616 = vmax.xlane.f32.xlu1 %v615_v36 }
 0x431   :  { %329 = vadd.xlane.f32.xlu1 %v328_v37 }
 0x4b6   :  { %v614_v46 = vpop.xlane.xlu1 %613 }
 0x4b7   :  { %v618_v47 = vsub.f32 %v610_v32, %v614_v46 }
 0x4b9   :  { %v620_v48 = vmul.f32 1.442695, %v618_v47 }
 0x4ba   :  { %v617_v49 = vpop.xlane.xlu1 %616 }
 0x4bb   :  { %2398 = vpow2.f32 %v620_v48  ;;  %v619_v51 = vsub.f32 %v611_v34, %v617_v49 }
 0x4bc   :  { %2400 = vrcp.f32 %v327_v50 }
 0x4bd   :  { %v622_v52 = vmul.f32 1.442695, %v619_v51 }
 0x4be   :  { %v330_v53 = vpop.xlane.xlu1 %329 }
 0x4bf   :  { %2402 = vpow2.f32 %v622_v52 }
 0x4c0   :  { %2404 = vrcp.f32 %v330_v53 }
 0x4c5   :  { %v2399_v54 = vpop.eup %2398 }
 0x4c6   :  { %v624_v55 = vsel %vm98_vm1, %v2399_v54, 0.0  ;;  %v2401_v57 = vpop.eup %2400 }
 0x4c7   :  { %625 = vadd.xlane.f32.xlu0 %v624_v55  ;;  %v381_v63 = vmul.f32 %v2401_v57, %v2643_v11  ;;  %v818_v57 = vrot.slane %v2693_v23, %v817_v56 }
 0x4c9   :  { %v2403_v58 = vpop.eup %2402 }
 0x4ca   :  { %v2405_v59 = vpop.eup %2404  ;;  %v627_v60 = vsel %vm98_vm1, %v2403_v58, 0.0  ;;  %v630_v61 = vpack.c.bf16 %v2403_v58, %v2399_v54  ;;  %v823_v58 = vsub.s32 4, %v2589_v26 }
 0x4cb   :  { %v382_v0 = vmul.f32 %v2405_v59, %v2645_v13  ;;  %628 = vadd.xlane.f32.xlu1 %v627_v60 }
 0x4cc   :  { %2248 = vmatmul.mubr.msk.bf16.vlgmr.msra.gmra.mrb[16].mxu1 %vm98_vm1, %v630_v61 }
 0x4cd   :  { %2258 = vmatpush3.bf16.msra.mxu1 %v737_v62  ;;  %2259 = vmatprep.mubr.msk.bf16.mxu1 %vm2467_vm0, %v2466_v2  ;;  %v384_v1 = vpack.c.bf16 %v382_v0, %v381_v63  ;;  %v824_v0 = vrot.slane %v2693_v23, %v823_v58 }
 0x4ce   :  { %2269 = vmatprep.subr.bf16.mxu1 %v2466_v2 }
 0x4d4   :  { %2260 = vmatmul.mubr.msk.bf16.vlgmr.msra.gmra.mrb[20].mxu1 %vm261_vm2, %v384_v1 }
 0x4d5   :  { %2273 = vmatprep.mubr.msk.bf16.mxu1 %vm2467_vm0, %v2466_v2 }
 0x554   :  { %v626_v8 = vpop.xlane.xlu0 %625 }
 0x555   :  { %2406 = vrcp.f32 %v626_v8 }
 0x558   :  { %v629_v9 = vpop.xlane.xlu1 %628 }
 0x559   :  { %2408 = vrcp.f32 %v629_v9  ;;  %v2382_v9 = vld [vmem:[%s2952_s5] sm:$0xff]  }
 0x55a   :  { %2270 = vmatpush3.bf16.msra.mxu1 %v2382_v9  ;;  %v2386_v9 = vld [vmem:[%s2948_s1 + $0x50] sm:$0xff]  }
 0x55b   :  { %2271 = vmatprep.subr.bf16.mxu1 %v2466_v2 }
 0x55f   :  { %v2407_v11 = vpop.eup %2406 }
 0x563   :  { %v2409_v13 = vpop.eup %2408 }
 0x59f   :  { %v669_v10 = vpop.f32.mrb[16].mxu1 }
 0x5a0   :  { %v2249_v12 = vpop.f32.mrb[17].mxu1  ;;  %v680_v15 = vmul.f32 %v2407_v11, %v669_v10  ;;  %v2383_v10 = vld [vmem:[%s2952_s5 + $0x8] sm:$0xff]   ;;  %v832_v11 = vsub.s32 1, %v2589_v26 }
 0x5a1   :  { %v672_v14 = vpop.f32.mrb[18].mxu1  ;;  %2272 = vmatpush3.bf16.msra.mxu1 %v2383_v10 }
 0x5a2   :  { %v681_v16 = vmul.f32 %v2409_v13, %v672_v14  ;;  %v2250_v17 = vpop.f32.mrb[19].mxu1  ;;  %2283 = vmatprep.subr.bf16.mxu1 %v2466_v2  ;;  %v833_v12 = vrot.slane %v2693_v23, %v832_v11 }
 0x5a4   :  { %v684_v18 = vpack.c.bf16 %v681_v16, %v680_v15 }
 0x5a6   :  { %2254 = vmatmul.mubr.msk.bf16.vlgmr.msra.gmra.mrb[20].mxu0 %vm261_vm2, %v684_v18 }
 0x5a7   :  { %v773_v19 = vpop.f32.mrb[20].mxu1  ;;  %2265 = vmatprep.mubr.msk.bf16.mxu0 %vm2467_vm0, %v2466_v2 }
 0x5a8   :  { %v2261_v20 = vpop.f32.mrb[21].mxu1 }
 0x5a9   :  { %v776_v21 = vpop.f32.mrb[22].mxu1 }
 0x5aa   :  { %v2262_v5 = vpop.f32.mrb[23].mxu1 }
 0x5ab   :  { %v893_v5 = vsub.s32 2, %v2589_v26 }
 0x679   :  { %v726_v25 = vpop.f32.mrb[20].mxu0 }
 0x67a   :  { %v774_v28 = vadd.f32 %v773_v19, %v726_v25  ;;  %v2255_v29 = vpop.f32.mrb[21].mxu0 }
 0x67b   :  { %v729_v30 = vpop.f32.mrb[22].mxu0 }
 0x67c   :  { %v784_v32 = vadd.f32 %v783_v24, %v774_v28  ;;  %v777_v33 = vadd.f32 %v776_v21, %v729_v30  ;;  %v2256_v34 = vpop.f32.mrb[23].mxu0 }
 0x67e   :  { %v785_v36 = vadd.f32 %v783_v24, %v777_v33  ;;  %v786_v37 = vadd.f32 %v784_v32, %v2541_v3  ;;  %v894_v24 = vrot.slane %v2693_v23, %v893_v5 }
 0x680   :  { %v788_v38 = vsel %vm98_vm1, %v786_v37, 0.0  ;;  %v787_v39 = vadd.f32 %v785_v36, %v2546_v4  ;;  %v2381_v4 = vld [vmem:[%s2951_s4] sm:$0xff]  }
 0x681   :  { %789 = vadd.xlane.f32.xlu0 %v788_v38  ;;  %2264 = vmatpush3.bf16.msra.mxu0 %v2381_v4 }
 0x682   :  { %v791_v40 = vsel %vm98_vm1, %v787_v39, 0.0  ;;  %2277 = vmatprep.subr.bf16.mxu0 %v2466_v2 }
 0x683   :  { %792 = vadd.xlane.f32.xlu1 %v791_v40 }
 0x70e   :  { %v790_v41 = vpop.xlane.xlu0 %789 }
 0x70f   :  { %v795_v42 = vmul.f32 0.0625, %v790_v41 }
 0x710   :  { %v793_v43 = vpop.xlane.xlu1 %792 }
 0x711   :  { %v797_v44 = vsub.f32 %v786_v37, %v795_v42  ;;  %v796_v45 = vmul.f32 0.0625, %v793_v43 }
 0x713   :  { %v798_v46 = vsub.f32 %v787_v39, %v796_v45  ;;  %v799_v47 = vmul.f32 %v797_v44, %v797_v44 }
 0x715   :  { %v801_v48 = vsel %vm98_vm1, %v799_v47, 0.0  ;;  %v800_v49 = vmul.f32 %v798_v46, %v798_v46 }
 0x716   :  { %802 = vadd.xlane.f32.xlu0 %v801_v48 }
 0x717   :  { %v804_v3 = vsel %vm98_vm1, %v800_v49, 0.0  ;;  %v2384_v49 = vld [vmem:[%s2948_s1 + $0x40] sm:$0xff]  }
 0x718   :  { %805 = vadd.xlane.f32.xlu1 %v804_v3  ;;  %v2385_v3 = vld [vmem:[%s2948_s1 + $0x30] sm:$0xff]  }
 0x7a3   :  { %v803_v50 = vpop.xlane.xlu0 %802 }
 0x7a4   :  { %v807_v51 = vmul.f32 0.0625, %v803_v50 }
 0x7a5   :  { %v806_v52 = vpop.xlane.xlu1 %805 }
 0x7a6   :  { %v809_v53 = vadd.f32 1e-05, %v807_v51  ;;  %v808_v54 = vmul.f32 0.0625, %v806_v52 }
 0x7a8   :  { %2410 = vrsqrt.f32 %v809_v53  ;;  %v810_v55 = vadd.f32 1e-05, %v808_v54 }
 0x7aa   :  { %2412 = vrsqrt.f32 %v810_v55  ;;  %v982_v55 = vsub.s32 5, %v2589_v26 }
 0x7b2   :  { %v2411_v59 = vpop.eup %2410 }
 0x7b3   :  { %v813_v60 = vmul.f32 %v2411_v59, %v797_v44  ;;  %v988_v59 = vsub.s32 6, %v2589_v26 }
 0x7b4   :  { %v2413_v61 = vpop.eup %2412 }
 0x7b5   :  { %v819_v62 = vmul.f32 %v818_v57, %v813_v60  ;;  %v814_v63 = vmul.f32 %v2413_v61, %v798_v46 }
 0x7b7   :  { %v820_v1 = vmul.f32 %v818_v57, %v814_v63  ;;  %v825_v6 = vadd.f32 %v824_v0, %v819_v62  ;;  %v983_v57 = vrot.slane %v2693_v23, %v982_v55  ;;  %v989_v63 = vrot.slane %v2693_v23, %v988_v59  ;;  %v2074_v23 = vld [vmem:[%s2949_s2 + $0x6] ss:$0 sm:$0xff] }
 0x7b9   :  { %v826_v7 = vadd.f32 %v824_v0, %v820_v1 }
 0x7bb   :  { %v829_v8 = vpack.c.bf16 %v826_v7, %v825_v6 }
 0x7bd   :  { %2266 = vmatmul.mubr.msk.bf16.vlgmr.msra.gmra.mrb[24].mxu0 %vm98_vm1, %v829_v8 }
 0x7be   :  { %2279 = vmatprep.mubr.msk.bf16.mxu0 %vm2467_vm0, %v2466_v2  ;;  %2278 = vmatpush3.bf16.msra.mxu0 %v2385_v3 }
 0x7bf   :  { %2289 = vmatprep.subr.bf16.mxu0 %v2466_v2 }
 0x890   :  { %v877_v13 = vpop.f32.mrb[24].mxu0 }
 0x891   :  { %v878_v14 = vadd.f32 %v877_v13, %v833_v12  ;;  %v2267_v15 = vpop.f32.mrb[25].mxu0  ;;  %v2080_v13 = vld [vmem:[%s2949_s2 + $0x8] ss:$0 sm:$0xff] }
 0x892   :  { %v880_v16 = vpop.f32.mrb[26].mxu0 }
 0x893   :  { %v881_v17 = vadd.f32 %v880_v16, %v833_v12  ;;  %v2268_v18 = vpop.f32.mrb[27].mxu0  ;;  %v884_v19 = vmax.f32 %v878_v14, 0.0 }
 0x895   :  { %v885_v20 = vmax.f32 %v881_v17, 0.0 }
 0x897   :  { %v890_v21 = vpack.c.bf16 %v885_v20, %v884_v19 }
 0x899   :  { %2274 = vmatmul.mubr.msk.bf16.vlgmr.msra.gmra.mrb[24].mxu1 %vm907_vm12, %v890_v21 }
 0x89a   :  { %2285 = vmatprep.mubr.msk.bf16.mxu1 %vm2467_vm0, %v2466_v2  ;;  %2284 = vmatpush3.bf16.msra.mxu1 %v2384_v49 }
 0x89b   :  { %2295 = vmatprep.subr.bf16.mxu1 %v2466_v2 }
 0x96c   :  { %v945_v25 = vpop.f32.mrb[24].mxu1 }
 0x96d   :  { %v946_v28 = vadd.f32 %v945_v25, %v894_v24  ;;  %v2275_v29 = vpop.f32.mrb[25].mxu1 }
 0x96e   :  { %v948_v30 = vpop.f32.mrb[26].mxu1 }
 0x96f   :  { %v949_v32 = vadd.f32 %v948_v30, %v894_v24  ;;  %v2276_v33 = vpop.f32.mrb[27].mxu1  ;;  %v952_v34 = vadd.f32 %v946_v28, %v825_v6 }
 0x970   :  { %v2086_v33 = vld [vmem:[%s2949_s2 + $0xa] ss:$0 sm:$0xff] }
 0x971   :  { %v954_v36 = vsel %vm98_vm1, %v952_v34, 0.0  ;;  %v953_v37 = vadd.f32 %v949_v32, %v826_v7 }
 0x972   :  { %955 = vadd.xlane.f32.xlu0 %v954_v36 }
 0x973   :  { %v957_v38 = vsel %vm98_vm1, %v953_v37, 0.0 }
 0x974   :  { %958 = vadd.xlane.f32.xlu1 %v957_v38 }
 0x9ff   :  { %v956_v39 = vpop.xlane.xlu0 %955 }
 0xa00   :  { %v960_v40 = vmul.f32 0.0625, %v956_v39 }
 0xa01   :  { %v959_v41 = vpop.xlane.xlu1 %958 }
 0xa02   :  { %v962_v42 = vsub.f32 %v952_v34, %v960_v40  ;;  %v961_v43 = vmul.f32 0.0625, %v959_v41  ;;  %v2387_v41 = vld [vmem:[%s2948_s1 + $0x38] sm:$0xff]  }
 0xa04   :  { %v963_v44 = vsub.f32 %v953_v37, %v961_v43  ;;  %v964_v45 = vmul.f32 %v962_v42, %v962_v42  ;;  %v2388_v43 = vld [vmem:[%s2948_s1 + $0x58] sm:$0xff]  }
 0xa06   :  { %v966_v46 = vsel %vm98_vm1, %v964_v45, 0.0  ;;  %v965_v47 = vmul.f32 %v963_v44, %v963_v44 }
 0xa07   :  { %967 = vadd.xlane.f32.xlu0 %v966_v46 }
 0xa08   :  { %v969_v48 = vsel %vm98_vm1, %v965_v47, 0.0 }
 0xa09   :  { %970 = vadd.xlane.f32.xlu1 %v969_v48 }
 0xa94   :  { %v968_v4 = vpop.xlane.xlu0 %967 }
 0xa95   :  { %v972_v50 = vmul.f32 0.0625, %v968_v4 }
 0xa96   :  { %v971_v51 = vpop.xlane.xlu1 %970 }
 0xa97   :  { %v974_v52 = vadd.f32 1e-05, %v972_v50  ;;  %v973_v53 = vmul.f32 0.0625, %v971_v51 }
 0xa99   :  { %2414 = vrsqrt.f32 %v974_v52  ;;  %v975_v54 = vadd.f32 1e-05, %v973_v53  ;;  %v2095_v52 = vld [vmem:[%s2949_s2 + $0x7] ss:$0 sm:$0xff] }
 0xa9b   :  { %2416 = vrsqrt.f32 %v975_v54 }
 0xaa3   :  { %v2415_v60 = vpop.eup %2414 }
 0xaa4   :  { %v978_v61 = vmul.f32 %v2415_v60, %v962_v42 }
 0xaa5   :  { %v2417_v62 = vpop.eup %2416 }
 0xaa6   :  { %v984_v0 = vmul.f32 %v983_v57, %v978_v61  ;;  %v979_v1 = vmul.f32 %v2417_v62, %v963_v44 }
 0xaa8   :  { %v985_v6 = vmul.f32 %v983_v57, %v979_v1  ;;  %v2757_v7 = vadd.f32 %v989_v63, %v984_v0  ;;  %v2107_v0 = vld [vmem:[%s2949_s2 + $0xb] ss:$0 sm:$0xff] }
 0xaaa   :  { %v2759_v8 = vadd.f32 %v989_v63, %v985_v6 }
 0xaac   :  { %v2766_v10 = vpack.c.bf16 %v2759_v8, %v2757_v7 }
 0xaae   :  { %2280 = vmatmul.mubr.msk.bf16.vlgmr.msra.gmra.mrb[28].mxu0 %vm98_vm1, %v2766_v10  ;;  %2286 = vmatmul.mubr.msk.bf16.vlgmr.msra.gmra.mrb[28].mxu1 %vm98_vm1, %v2766_v10 }
 0xaaf   :  { %2290 = vmatpush3.bf16.msra.mxu0 %v2386_v9  ;;  %2291 = vmatprep.mubr.msk.bf16.mxu0 %vm2467_vm0, %v2466_v2 }
 0xab0   :  { %2297 = vmatprep.mubr.msk.bf16.mxu1 %vm2467_vm0, %v2466_v2  ;;  %2301 = vmatprep.subr.bf16.mxu0 %v2466_v2 }
 0xab6   :  { %2292 = vmatmul.mubr.msk.bf16.vlgmr.msra.gmra.mrb[32].mxu0 %vm98_vm1, %v2766_v10 }
 0xab7   :  { %2303 = vmatprep.mubr.msk.bf16.mxu0 %vm2467_vm0, %v2466_v2 }
 0xb81   :  { %v1049_v12 = vpop.f32.mrb[28].mxu0  ;;  %v1107_v14 = vpop.f32.mrb[28].mxu1 }
 0xb82   :  { %v2281_v15 = vpop.f32.mrb[29].mxu0  ;;  %v2287_v16 = vpop.f32.mrb[29].mxu1  ;;  %v1050_v19 = vadd.f32 %v2074_v23, %v1049_v12  ;;  %v1108_v20 = vadd.f32 %v2080_v13, %v1107_v14 }
 0xb83   :  { %v1052_v17 = vpop.f32.mrb[30].mxu0  ;;  %v1110_v18 = vpop.f32.mrb[30].mxu1 }
 0xb84   :  { %v1053_v21 = vadd.f32 %v2074_v23, %v1052_v17  ;;  %v1111_v24 = vadd.f32 %v2080_v13, %v1110_v18  ;;  %v2282_v25 = vpop.f32.mrb[31].mxu0  ;;  %v2288_v28 = vpop.f32.mrb[31].mxu1 }
 0xb85   :  { %v2389_v25 = vld [vmem:[%s2948_s1 + $0x48] sm:$0xff]  }
 0xb86   :  { %v1172_v29 = vpack.c.bf16 %v1053_v21, %v1050_v19  ;;  %v1173_v30 = vpack.c.bf16 %v1111_v24, %v1108_v20 }
 0xb88   :  { %v1178_v32 = vsel %vm261_vm2, %v1173_v30, 0 }
 0xb89   :  { %v1165_v34 = vpop.f32.mrb[32].mxu0  ;;  %2296 = vmatpush3.bf16.xpose.msra.mxu1 %v1178_v32 }
 0xb8a   :  { %v2293_v36 = vpop.f32.mrb[33].mxu0  ;;  %2307 = vmatprep.subr.bf16.mxu1 %v2466_v2  ;;  %v1166_v38 = vadd.f32 %v2086_v33, %v1165_v34  ;;  %v2101_v34 = vld [vmem:[%s2949_s2 + $0x9] ss:$0 sm:$0xff] }
 0xb8b   :  { %v1168_v37 = vpop.f32.mrb[34].mxu0 }
 0xb8c   :  { %v1169_v39 = vadd.f32 %v2086_v33, %v1168_v37  ;;  %v2294_v40 = vpop.f32.mrb[35].mxu0 }
 0xb8e   :  { %v1244_v42 = vpack.c.bf16 %v1169_v39, %v1166_v38 }
 0xb90   :  { %2298 = vmatmul.mubr.msk.bf16.vlgmr.msra.gmra.mrb[32].mxu1 %vm261_vm2, %v1172_v29  ;;  %2302 = vmatpush3.bf16.msra.mxu0 %v1244_v42 }
 0xb91   :  { %2308 = vmatpush3.bf16.msra.mxu1 %v2387_v41  ;;  %2309 = vmatprep.mubr.msk.bf16.mxu1 %vm2467_vm0, %v2466_v2 }
 0xb92   :  { %2319 = vmatprep.subr.bf16.mxu1 %v2466_v2  ;;  %2313 = vmatprep.subr.bf16.mxu0 %v2466_v2 }
 0xb98   :  { %2310 = vmatmul.mubr.msk.bf16.vlgmr.msra.gmra.mrb[36].mxu1 %vm98_vm1, %v2766_v10 }
 0xb99   :  { %2320 = vmatpush3.bf16.msra.mxu1 %v2388_v43  ;;  %2321 = vmatprep.mubr.msk.bf16.mxu1 %vm2467_vm0, %v2466_v2 }
 0xb9a   :  { %2331 = vmatprep.subr.bf16.mxu1 %v2466_v2 }
 0xba0   :  { %2322 = vmatmul.mubr.msk.bf16.vlgmr.msra.gmra.mrb[40].mxu1 %vm98_vm1, %v2766_v10 }
 0xba1   :  { %2333 = vmatprep.mubr.msk.bf16.mxu1 %vm2467_vm0, %v2466_v2 }
 0xc63   :  { %v1214_v44 = vpop.f32.mrb[32].mxu1 }
 0xc64   :  { %v1221_v45 = vmul.f32 0.35355338, %v1214_v44  ;;  %v2299_v46 = vpop.f32.mrb[33].mxu1 }
 0xc65   :  { %v1217_v47 = vpop.f32.mrb[34].mxu1 }
 0xc66   :  { %v1222_v48 = vmul.f32 0.35355338, %v1217_v47  ;;  %v2300_v49 = vpop.f32.mrb[35].mxu1  ;;  %v1223_v3 = vadd.f32 %v1221_v45, %v2600_v31 }
 0xc68   :  { %v1225_v4 = vsel %vm98_vm1, %v1223_v3, -inf  ;;  %v1224_v50 = vadd.f32 %v1222_v48, %v2602_v35 }
 0xc69   :  { %1226 = vmax.xlane.f32.xlu0 %v1225_v4 }
 0xc6a   :  { %v1228_v51 = vsel %vm98_vm1, %v1224_v50, -inf }
 0xc6b   :  { %1229 = vmax.xlane.f32.xlu1 %v1228_v51  ;;  %v1349_v53 = vpop.f32.mrb[36].mxu1 }
 0xc6c   :  { %v2311_v54 = vpop.f32.mrb[37].mxu1  ;;  %v1350_v60 = vadd.f32 %v2095_v52, %v1349_v53 }
 0xc6d   :  { %v1352_v57 = vpop.f32.mrb[38].mxu1 }
 0xc6e   :  { %v1353_v61 = vadd.f32 %v2095_v52, %v1352_v57  ;;  %v2312_v62 = vpop.f32.mrb[39].mxu1 }
 0xc70   :  { %v1472_v63 = vpack.c.bf16 %v1353_v61, %v1350_v60 }
 0xc73   :  { %v1465_v1 = vpop.f32.mrb[40].mxu1 }
 0xc74   :  { %v2323_v6 = vpop.f32.mrb[41].mxu1  ;;  %v1466_v23 = vadd.f32 %v2107_v0, %v1465_v1 }
 0xc75   :  { %v1468_v9 = vpop.f32.mrb[42].mxu1 }
 0xc76   :  { %v1469_v12 = vadd.f32 %v2107_v0, %v1468_v9  ;;  %v2324_v13 = vpop.f32.mrb[43].mxu1  ;;  %v2091_v0 = vld [vmem:[%s2950_s3 + $0x8] sm:$0xf] }
 0xc78   :  { %v1544_v14 = vpack.c.bf16 %v1469_v12, %v1466_v23 }
 0xc7a   :  { %2332 = vmatpush3.bf16.msra.mxu1 %v1544_v14  ;;  %v1649_v14 = vsel %vm688_vm11, %v2091_v0, 0 }
 0xc7b   :  { %2343 = vmatprep.subr.bf16.mxu1 %v2466_v2 }
 0xcf6   :  { %v1227_v15 = vpop.xlane.xlu0 %1226 }
 0xcf7   :  { %v1231_v16 = vsub.f32 %v1223_v3, %v1227_v15 }
 0xcf8   :  { %v1230_v17 = vpop.xlane.xlu1 %1229 }
 0xcf9   :  { %v1233_v18 = vmul.f32 1.442695, %v1231_v16  ;;  %v1232_v19 = vsub.f32 %v1224_v50, %v1230_v17 }
 0xcfb   :  { %v1235_v20 = vmul.f32 1.442695, %v1232_v19  ;;  %2418 = vpow2.f32 %v1233_v18  ;;  %v2112_v18 = vld [vmem:[%s2950_s3 + $0xc] sm:$0xf] }
 0xcfc   :  { %v1602_v19 = vsel %vm688_vm11, %v2112_v18, 0 }
 0xcfd   :  { %2420 = vpow2.f32 %v1235_v20 }
 0xd05   :  { %v2419_v21 = vpop.eup %2418 }
 0xd06   :  { %v1237_v51 = vsel %vm98_vm1, %v2419_v21, 0.0 }
 0xd07   :  { %v2421_v24 = vpop.eup %2420 }
 0xd08   :  { %v1243_v28 = vpack.c.bf16 %v2421_v24, %v2419_v21  ;;  %v1240_v52 = vsel %vm98_vm1, %v2421_v24, 0.0 }
 0xd0a   :  { %2304 = vmatmul.mubr.msk.bf16.vlgmr.msra.gmra.mrb[36].mxu0 %vm98_vm1, %v1243_v28 }
 0xd0b   :  { %2314 = vmatpush3.bf16.msra.mxu0 %v2389_v25  ;;  %2315 = vmatprep.mubr.msk.bf16.mxu0 %vm2467_vm0, %v2466_v2 }
 0xd0c   :  { %2325 = vmatprep.subr.bf16.mxu0 %v2466_v2 }
 0xd12   :  { %2316 = vmatmul.mubr.msk.bf16.vlgmr.msra.gmra.mrb[40].mxu0 %vm98_vm1, %v2766_v10 }
 0xd13   :  { %2327 = vmatprep.mubr.msk.bf16.mxu0 %vm2467_vm0, %v2466_v2 }
 0xddd   :  { %v1282_v29 = vpop.f32.mrb[36].mxu0 }
 0xdde   :  { %v2305_v30 = vpop.f32.mrb[37].mxu0 }
 0xddf   :  { %v1285_v32 = vpop.f32.mrb[38].mxu0 }
 0xde0   :  { %v2306_v33 = vpop.f32.mrb[39].mxu0 }
 0xde5   :  { %v1407_v36 = vpop.f32.mrb[40].mxu0 }
 0xde6   :  { %v2317_v37 = vpop.f32.mrb[41].mxu0  ;;  %v1408_v39 = vadd.f32 %v2101_v34, %v1407_v36 }
 0xde7   :  { %v1410_v38 = vpop.f32.mrb[42].mxu0 }
 0xde8   :  { %v1411_v40 = vadd.f32 %v2101_v34, %v1410_v38  ;;  %v2318_v41 = vpop.f32.mrb[43].mxu0 }
 0xde9   :  { %v2872_v41 = vld [vmem:[%s2953_s6 + $0x8] sm:$0xff] }
 0xdea   :  { %v1473_v42 = vpack.c.bf16 %v1411_v40, %v1408_v39  ;;  %v1735_v18 = vrot.slane %v2872_v41, %v823_v58  ;;  %v2392_v58 = vld [vmem:[%s2952_s5 + $0x18] sm:$0xff]  }
 0xdec   :  { %v1478_v10 = vsel %vm261_vm2, %v1473_v42, 0  ;;  %v1695_v42 = vrot.slane %v2872_v41, %v2688_v22 }
 0xded   :  { %2326 = vmatpush3.bf16.xpose.msra.mxu0 %v1478_v10 }
 0xdee   :  { %2337 = vmatprep.subr.bf16.mxu0 %v2466_v2 }
 0xdf4   :  { %2328 = vmatmul.mubr.msk.bf16.vlgmr.msra.gmra.mrb[44].mxu0 %vm261_vm2, %v1472_v63 }
 0xdf5   :  { %2339 = vmatprep.mubr.msk.bf16.mxu0 %vm2467_vm0, %v2466_v2  ;;  %2338 = vmatpush3.bf16.msra.mxu0 %v1602_v19 }
 0xdf6   :  { %2349 = vmatprep.subr.bf16.mxu0 %v2466_v2 }
 0xec7   :  { %v1514_v43 = vpop.f32.mrb[44].mxu0 }
 0xec8   :  { %v1521_v44 = vmul.f32 0.35355338, %v1514_v43  ;;  %v2329_v45 = vpop.f32.mrb[45].mxu0 }
 0xec9   :  { %v1517_v46 = vpop.f32.mrb[46].mxu0 }
 0xeca   :  { %v1522_v47 = vmul.f32 0.35355338, %v1517_v46  ;;  %v2330_v48 = vpop.f32.mrb[47].mxu0  ;;  %v1523_v49 = vadd.f32 %v1521_v44, %v2600_v31 }
 0xecc   :  { %v1525_v3 = vsel %vm98_vm1, %v1523_v49, -inf  ;;  %v1524_v4 = vadd.f32 %v1522_v47, %v2602_v35 }
 0xecd   :  { %1526 = vmax.xlane.f32.xlu0 %v1525_v3 }
 0xece   :  { %v1528_v50 = vsel %vm98_vm1, %v1524_v4, -inf }
 0xecf   :  { %1529 = vmax.xlane.f32.xlu1 %v1528_v50 }
 0xed1   :  { %1238 = vadd.xlane.f32.xlu0 %v1237_v51 }
 0xed3   :  { %1241 = vadd.xlane.f32.xlu1 %v1240_v52 }
 0xf5a   :  { %v1527_v53 = vpop.xlane.xlu0 %1526 }
 0xf5b   :  { %v1531_v54 = vsub.f32 %v1523_v49, %v1527_v53 }
 0xf5c   :  { %v1530_v57 = vpop.xlane.xlu1 %1529 }
 0xf5d   :  { %v1533_v60 = vmul.f32 1.442695, %v1531_v54  ;;  %v1532_v61 = vsub.f32 %v1524_v4, %v1530_v57 }
 0xf5e   :  { %v1239_v31 = vpop.xlane.xlu0 %1238 }
 0xf5f   :  { %2422 = vpow2.f32 %v1533_v60  ;;  %v1535_v62 = vmul.f32 1.442695, %v1532_v61 }
 0xf60   :  { %2424 = vrcp.f32 %v1239_v31  ;;  %v1242_v35 = vpop.xlane.xlu1 %1241 }
 0xf61   :  { %2426 = vpow2.f32 %v1535_v62 }
 0xf62   :  { %2428 = vrcp.f32 %v1242_v35 }
 0xf69   :  { %v2423_v63 = vpop.eup %2422 }
 0xf6a   :  { %v2425_v1 = vpop.eup %2424  ;;  %v1537_v6 = vsel %vm98_vm1, %v2423_v63, 0.0 }
 0xf6b   :  { %v2427_v9 = vpop.eup %2426  ;;  %1538 = vadd.xlane.f32.xlu0 %v1537_v6  ;;  %v1293_v15 = vmul.f32 %v2425_v1, %v1282_v29 }
 0xf6c   :  { %v2429_v23 = vpop.eup %2428  ;;  %v1540_v12 = vsel %vm98_vm1, %v2427_v9, 0.0  ;;  %v1543_v13 = vpack.c.bf16 %v2427_v9, %v2423_v63 }
 0xf6d   :  { %v1294_v16 = vmul.f32 %v2429_v23, %v1285_v32  ;;  %1541 = vadd.xlane.f32.xlu1 %v1540_v12  ;;  %v1729_v12 = vrot.slane %v2872_v41, %v817_v56  ;;  %v2391_v56 = vld [vmem:[%s2952_s5 + $0x10] sm:$0xff]  }
 0xf6e   :  { %2334 = vmatmul.mubr.msk.bf16.vlgmr.msra.gmra.mrb[44].mxu1 %vm98_vm1, %v1543_v13 }
 0xf6f   :  { %2344 = vmatpush3.bf16.msra.mxu1 %v1649_v14  ;;  %2345 = vmatprep.mubr.msk.bf16.mxu1 %vm2467_vm0, %v2466_v2  ;;  %v1297_v17 = vpack.c.bf16 %v1294_v16, %v1293_v15 }
 0xf70   :  { %2355 = vmatprep.subr.bf16.mxu1 %v2466_v2 }
 0xf76   :  { %2346 = vmatmul.mubr.msk.bf16.vlgmr.msra.gmra.mrb[48].mxu1 %vm261_vm2, %v1297_v17 }
 0xf77   :  { %2359 = vmatprep.mubr.msk.bf16.mxu1 %vm2467_vm0, %v2466_v2  ;;  %2356 = vmatpush3.bf16.msra.mxu1 %v2391_v56 }
 0xf78   :  { %2357 = vmatprep.subr.bf16.mxu1 %v2466_v2 }
 0xf7b   :  { %2358 = vmatpush3.bf16.msra.mxu1 %v2392_v58 }
 0xff8   :  { %v1539_v20 = vpop.xlane.xlu0 %1538 }
 0xff9   :  { %2430 = vrcp.f32 %v1539_v20 }
 0xffa   :  { %v1542_v21 = vpop.xlane.xlu1 %1541 }
 0xffb   :  { %2432 = vrcp.f32 %v1542_v21 }
0x1003   :  { %v2431_v25 = vpop.eup %2430 }
0x1005   :  { %v2433_v29 = vpop.eup %2432 }
0x1041   :  { %v1582_v24 = vpop.f32.mrb[44].mxu1 }
0x1042   :  { %v2335_v28 = vpop.f32.mrb[45].mxu1  ;;  %v1593_v32 = vmul.f32 %v2431_v25, %v1582_v24  ;;  %v1745_v25 = vrot.slane %v2872_v41, %v832_v11 }
0x1043   :  { %v1585_v30 = vpop.f32.mrb[46].mxu1 }
0x1044   :  { %v1594_v33 = vmul.f32 %v2433_v29, %v1585_v30  ;;  %v2336_v34 = vpop.f32.mrb[47].mxu1 }
0x1046   :  { %v1597_v36 = vpack.c.bf16 %v1594_v33, %v1593_v32 }
0x1048   :  { %2340 = vmatmul.mubr.msk.bf16.vlgmr.msra.gmra.mrb[48].mxu0 %vm261_vm2, %v1597_v36 }
0x1049   :  { %v1685_v37 = vpop.f32.mrb[48].mxu1  ;;  %2351 = vmatprep.mubr.msk.bf16.mxu0 %vm2467_vm0, %v2466_v2 }
0x104a   :  { %v2347_v38 = vpop.f32.mrb[49].mxu1 }
0x104b   :  { %v1688_v39 = vpop.f32.mrb[50].mxu1 }
0x104c   :  { %v2348_v40 = vpop.f32.mrb[51].mxu1 }
0x111b   :  { %v1638_v10 = vpop.f32.mrb[48].mxu0 }
0x111c   :  { %v1686_v43 = vadd.f32 %v1685_v37, %v1638_v10  ;;  %v2341_v44 = vpop.f32.mrb[49].mxu0 }
0x111d   :  { %v1641_v45 = vpop.f32.mrb[50].mxu0 }
0x111e   :  { %v1696_v46 = vadd.f32 %v1695_v42, %v1686_v43  ;;  %v1689_v47 = vadd.f32 %v1688_v39, %v1641_v45  ;;  %v2342_v48 = vpop.f32.mrb[51].mxu0  ;;  %v1807_v39 = vrot.slane %v2872_v41, %v893_v5 }
0x1120   :  { %v1697_v49 = vadd.f32 %v1695_v42, %v1689_v47  ;;  %v1698_v3 = vadd.f32 %v1696_v46, %v2757_v7 }
0x1122   :  { %v1700_v4 = vsel %vm98_vm1, %v1698_v3, 0.0  ;;  %v1699_v50 = vadd.f32 %v1697_v49, %v2759_v8  ;;  %v2390_v8 = vld [vmem:[%s2951_s4 + $0x8] sm:$0xff]  }
0x1123   :  { %1701 = vadd.xlane.f32.xlu0 %v1700_v4  ;;  %2350 = vmatpush3.bf16.msra.mxu0 %v2390_v8 }
0x1124   :  { %v1703_v51 = vsel %vm98_vm1, %v1699_v50, 0.0  ;;  %2363 = vmatprep.subr.bf16.mxu0 %v2466_v2 }
0x1125   :  { %1704 = vadd.xlane.f32.xlu1 %v1703_v51 }
0x11b0   :  { %v1702_v52 = vpop.xlane.xlu0 %1701 }
0x11b1   :  { %v1706_v53 = vmul.f32 0.0625, %v1702_v52 }
0x11b2   :  { %v1705_v54 = vpop.xlane.xlu1 %1704 }
0x11b3   :  { %v1708_v57 = vsub.f32 %v1698_v3, %v1706_v53  ;;  %v1707_v60 = vmul.f32 0.0625, %v1705_v54 }
0x11b5   :  { %v1709_v61 = vsub.f32 %v1699_v50, %v1707_v60  ;;  %v1710_v31 = vmul.f32 %v1708_v57, %v1708_v57  ;;  %v2393_v60 = vld [vmem:[%s2954_s7] sm:$0xff]  }
0x11b7   :  { %v1712_v62 = vsel %vm98_vm1, %v1710_v31, 0.0  ;;  %v1711_v35 = vmul.f32 %v1709_v61, %v1709_v61 }
0x11b8   :  { %1713 = vadd.xlane.f32.xlu0 %v1712_v62 }
0x11b9   :  { %v1715_v7 = vsel %vm98_vm1, %v1711_v35, 0.0 }
0x11ba   :  { %1716 = vadd.xlane.f32.xlu1 %v1715_v7 }
0x1245   :  { %v1714_v63 = vpop.xlane.xlu0 %1713 }
0x1246   :  { %v1718_v0 = vmul.f32 0.0625, %v1714_v63  ;;  %v1895_v63 = vrot.slane %v2872_v41, %v982_v55  ;;  %v2126_v55 = vld [vmem:[%s2955_s8] ss:$0 sm:$0xff]  ;;  %s2470_s8 = smov [#allocation3]  }
0x1247   :  { %v1717_v1 = vpop.xlane.xlu1 %1716 }
0x1248   :  { %v1720_v6 = vadd.f32 1e-05, %v1718_v0  ;;  %v1719_v9 = vmul.f32 0.0625, %v1717_v1 }
0x124a   :  { %2434 = vrsqrt.f32 %v1720_v6  ;;  %v1721_v23 = vadd.f32 1e-05, %v1719_v9 }
0x124c   :  { %2436 = vrsqrt.f32 %v1721_v23 }
0x1254   :  { %v2435_v13 = vpop.eup %2434 }
0x1255   :  { %v1724_v14 = vmul.f32 %v2435_v13, %v1708_v57 }
0x1256   :  { %v2437_v15 = vpop.eup %2436 }
0x1257   :  { %v1730_v16 = vmul.f32 %v1729_v12, %v1724_v14  ;;  %v1725_v17 = vmul.f32 %v2437_v15, %v1709_v61 }
0x1259   :  { %v1731_v19 = vmul.f32 %v1729_v12, %v1725_v17  ;;  %v1736_v20 = vadd.f32 %v1735_v18, %v1730_v16  ;;  %v1901_v12 = vrot.slane %v2872_v41, %v988_v59  ;;  %v2469_v17 = vmov 0  }
0x125a   :  { %2374 = vset.pattern.permute.xlu0 %v2469_v17 }
0x125b   :  { %v1737_v21 = vadd.f32 %v1735_v18, %v1731_v19  ;;  %v1964_v19 = vld [vmem:[%s2956_s9] sm:$0xff]  ;;  %s2017_s9 = sshll.u32 %s2470_s8, 4  ;;  %s2018_s9 = int_to_ptr.vmem [resolvable:$true] %s2017_s9 }
0x125c   :  { %s2442_s29 = scalar_lea.vmem %s2018_s9, 16  ;;  %s2446_s30 = scalar_lea.vmem %s2018_s9, 32 }
0x125d   :  { %v1741_v24 = vpack.c.bf16 %v1737_v21, %v1736_v20  ;;  %p2443_p0 = scmp.ne.s32.totalorder %s2018_s9, %s2442_s29  ;;  %p2447_p1 = scmp.lt.s32.totalorder %s2018_s9, %s2018_s9 }
0x125e   :  { %p2448_p2 = scmp.lt.s32.totalorder %s2446_s30, %s2442_s29 }
0x125f   :  { %2352 = vmatmul.mubr.msk.bf16.vlgmr.msra.gmra.mrb[52].mxu0 %vm98_vm1, %v1741_v24 }
0x1260   :  { %2365 = vmatprep.mubr.msk.bf16.mxu0 %vm2467_vm0, %v2466_v2  ;;  %2364 = vmatpush3.bf16.msra.mxu0 %v2393_v60  ;;  %vm2009_vm0 = vcmask 8192   ;;  %p2449_p3 = por %p2448_p2, %p2447_p1 }
0x1262   :  { %p2450_p4 = pnand %p2449_p3, %p2443_p0 }
0x1332   :  { %v1789_v28 = vpop.f32.mrb[52].mxu0 }
0x1333   :  { %v1790_v29 = vadd.f32 %v1789_v28, %v1745_v25  ;;  %v2353_v30 = vpop.f32.mrb[53].mxu0  ;;  %v1998_v28 = vld [vmem:[#allocation2] sm:$0x1] }
0x1334   :  { %v1792_v32 = vpop.f32.mrb[54].mxu0 }
0x1335   :  { %v1793_v33 = vadd.f32 %v1792_v32, %v1745_v25  ;;  %v2354_v34 = vpop.f32.mrb[55].mxu0  ;;  %v1796_v36 = vmax.f32 %v1790_v29, 0.0 }
0x1337   :  { %v1797_v37 = vmax.f32 %v1793_v33, 0.0 }
0x1339   :  { %v1803_v38 = vpack.c.bf16 %v1797_v37, %v1796_v36 }
0x133b   :  { %2360 = vmatmul.mubr.msk.bf16.vlgmr.msra.gmra.mrb[52].mxu1 %vm907_vm12, %v1803_v38 }
0x140e   :  { %v1857_v40 = vpop.f32.mrb[52].mxu1 }
0x140f   :  { %v1858_v42 = vadd.f32 %v1857_v40, %v1807_v39  ;;  %v2361_v10 = vpop.f32.mrb[53].mxu1  ;;  %v1965_v40 = vcvt.s32.f32 %v2591_v27 }
0x1410   :  { %v1860_v43 = vpop.f32.mrb[54].mxu1 }
0x1411   :  { %v1861_v11 = vadd.f32 %v1860_v43, %v1807_v39  ;;  %v2362_v44 = vpop.f32.mrb[55].mxu1  ;;  %v1864_v45 = vadd.f32 %v1858_v42, %v1736_v20  ;;  %v2129_v43 = vsel %vm1978_vm14, 1.0, %v2466_v2 }
0x1413   :  { %v1866_v46 = vsel %vm98_vm1, %v1864_v45, 0.0  ;;  %v1865_v47 = vadd.f32 %v1861_v11, %v1737_v21 }
0x1414   :  { %1867 = vadd.xlane.f32.xlu0 %v1866_v46  ;;  %v2130_v46 = vsel %vm1993_vm15, 1.0, %v2466_v2 }
0x1415   :  { %v1869_v48 = vsel %vm98_vm1, %v1865_v47, 0.0 }
0x1416   :  { %1870 = vadd.xlane.f32.xlu1 %v1869_v48 }
0x14a1   :  { %v1868_v49 = vpop.xlane.xlu0 %1867 }
0x14a2   :  { %v1872_v3 = vmul.f32 0.0625, %v1868_v49 }
0x14a3   :  { %v1871_v4 = vpop.xlane.xlu1 %1870 }
0x14a4   :  { %v1874_v50 = vsub.f32 %v1864_v45, %v1872_v3  ;;  %v1873_v51 = vmul.f32 0.0625, %v1871_v4  ;;  %v1966_v45 = vmul.f32 0.0, %v1965_v40 }
0x14a6   :  { %v1875_v5 = vsub.f32 %v1865_v47, %v1873_v51  ;;  %v1876_v52 = vmul.f32 %v1874_v50, %v1874_v50 }
0x14a8   :  { %v1878_v53 = vsel %vm98_vm1, %v1876_v52, 0.0  ;;  %v1877_v54 = vmul.f32 %v1875_v5, %v1875_v5 }
0x14a9   :  { %1879 = vadd.xlane.f32.xlu0 %v1878_v53 }
0x14aa   :  { %v1881_v57 = vsel %vm98_vm1, %v1877_v54, 0.0 }
0x14ab   :  { %1882 = vadd.xlane.f32.xlu1 %v1881_v57 }
0x1536   :  { %v1880_v61 = vpop.xlane.xlu0 %1879 }
0x1537   :  { %v1884_v31 = vmul.f32 0.0625, %v1880_v61 }
0x1538   :  { %v1883_v62 = vpop.xlane.xlu1 %1882 }
0x1539   :  { %v1886_v35 = vadd.f32 1e-05, %v1884_v31  ;;  %v1885_v7 = vmul.f32 0.0625, %v1883_v62 }
0x153b   :  { %2438 = vrsqrt.f32 %v1886_v35  ;;  %v1887_v8 = vadd.f32 1e-05, %v1885_v7 }
0x153d   :  { %2440 = vrsqrt.f32 %v1887_v8 }
0x1545   :  { %v2439_v0 = vpop.eup %2438 }
0x1546   :  { %v1890_v1 = vmul.f32 %v2439_v0, %v1874_v50 }
0x1547   :  { %v2441_v6 = vpop.eup %2440 }
0x1548   :  { %v1896_v9 = vmul.f32 %v1895_v63, %v1890_v1  ;;  %v1891_v23 = vmul.f32 %v2441_v6, %v1875_v5 }
0x154a   :  { %v1897_v13 = vmul.f32 %v1895_v63, %v1891_v23  ;;  %v1902_v14 = vadd.f32 %v1901_v12, %v1896_v9 }
0x154c   :  { %v1903_v15 = vadd.f32 %v1901_v12, %v1897_v13 }
0x154e   :  { %v1906_v16 = vpack.c.bf16 %v1903_v15, %v1902_v14 }
0x1550   :  { %2366 = vmatmul.mubr.msk.bf16.vlgmr.msra.gmra.mrb[56].mxu0 %vm98_vm1, %v1906_v16 }
0x1623   :  { %v1957_v18 = vpop.f32.mrb[56].mxu0 }
0x1624   :  { %v1958_v26 = vadd.f32 %v2126_v55, %v1957_v18  ;;  %v2367_v20 = vpop.f32.mrb[57].mxu0 }
0x1625   :  { %v1960_v59 = vpop.f32.mrb[58].mxu0 }
0x1626   :  { %v1961_v41 = vadd.f32 %v2126_v55, %v1960_v59  ;;  %v2368_v21 = vpop.f32.mrb[59].mxu0  ;;  %v1967_v24 = vmul.f32 %v1964_v19, %v1958_v26 }
0x1628   :  { %v1969_v56 = vsel %vm1968_vm13, %v1967_v24, 0.0  ;;  %v1983_v58 = vmul.f32 %v1964_v19, %v1961_v41 }
0x1629   :  { %1970 = vadd.xlane.f32.xlu0 %v1969_v56 }
0x162a   :  { %v1984_v25 = vsel %vm1968_vm13, %v1983_v58, 0.0 }
0x162b   :  { %1985 = vadd.xlane.f32.xlu1 %v1984_v25 }
0x163f   :  { %2001 = vperm.xlu0 %2374, %v1998_v28  }
0x16b6   :  { %v1971_v29 = vpop.xlane.xlu0 %1970 }
0x16b7   :  { %v1972_v30 = vrot.slane %v1971_v29, 4 }
0x16b8   :  { %v1986_v32 = vpop.xlane.xlu1 %1985 }
0x16b9   :  { %v1973_v33 = vadd.f32 %v1972_v30, %v1971_v29  ;;  %v1987_v34 = vrot.slane %v1986_v32, 4 }
0x16bb   :  { %v1974_v36 = vrot.slane %v1973_v33, 2  ;;  %v1988_v37 = vadd.f32 %v1987_v34, %v1986_v32 }
0x16bd   :  { %v1975_v38 = vadd.f32 %v1974_v36, %v1973_v33  ;;  %v1989_v39 = vrot.slane %v1988_v37, 2 }
0x16be   :  { %v2002_v47 = vpop.permute.xlu0 %2001 }
0x16bf   :  { %v1976_v42 = vrot.slane %v1975_v38, 1  ;;  %v1990_v10 = vadd.f32 %v1989_v39, %v1988_v37  ;;  %v2007_v50 = vrot.slane %v2002_v47, %v2688_v22 }
0x16c1   :  { %v1977_v11 = vadd.f32 %v1976_v42, %v1975_v38  ;;  %v1991_v44 = vrot.slane %v1990_v10, 1 }
0x16c3   :  { %v1981_v48 = vmul.f32 %v2129_v43, %v1977_v11  ;;  %v1992_v49 = vadd.f32 %v1991_v44, %v1990_v10 }
0x16c5   :  { %v1982_v3 = vadd.f32 %v1981_v48, %v1966_v45  ;;  %v1996_v4 = vmul.f32 %v2130_v46, %v1992_v49 }
0x16c7   :  { %v1997_v51 = vadd.f32 %v1996_v4, %v1982_v3 }
0x16c9   :  { %v2008_v5 = vadd.f32 %v2007_v50, %v1997_v51 }
0x16cb   :  { %2010 = vst.msk [vmem:[#allocation3] sm:$0x1] %vm2009_vm0, %v2008_v5 }
0x16cc   :  { %2453 = shalt.err (!%p2450_p4)
}
0x16cd   :  { %s2454_s14 = scalar_lea.hbm %s2958_s11, 16 }
0x16ce   :  { %p2455_p5 = scmp.ne.s32.totalorder %s2958_s11, %s2454_s14  ;;  %p2458_p6 = scmp.lt.u32.totalorder %s2454_s14, %s2958_s11 }
0x16d0   :  { %p2460_p7 = pnand %p2458_p6, %p2455_p5 }
0x16d2   :  { %2463 = shalt.err (!%p2460_p7)
}
0x16d3   :  { %2020 = dma.vmem_to_hbm [thread:$0]  %s2018_s9, 16, %s2958_s11, [#allocation4]  }
0x16d4   :  { %2464 = dma.done.wait [#allocation4], 16  }
0x16d5   :  { %2465 = vsyncadd [#allocation4], 4294967280 }
0x16d6   :  { %2024 = vsyncpa [#allocation4], 1 }

</bundles_post_ra>
